<compile_context>
chip_gen: v6e
topology: v6e:2x2x1
jax: 0.10.0
libtpu: 0.0.40
codegen_flags: <defaults>
</compile_context>

<pallas_src>
import math
from functools import partial

import jax
import jax.numpy as jnp
from jax import lax
from jax.experimental import pallas as pl
from jax.experimental.pallas import tpu as pltpu

# Small, module-consistent config (constructor args of TransformerModel).
INPUT_DIM = 64
HIDDEN_DIM = 32
NUM_HEADS = 4
NUM_LAYERS = 2
OUTPUT_DIM = 1
FF_DIM = HIDDEN_DIM * 4
HEAD_DIM = HIDDEN_DIM // NUM_HEADS
LN_EPS = 1e-5
LANES = 128


def _round8(n):
    return (n + 7) // 8 * 8


# ---------- static layout of the packed weight slab: (W_ROWS, 128) f32, row offsets ----------
W_IN_OFF = 0
_off = _round8(INPUT_DIM)                      # 64 rows for the input projection
W_LAYER_OFFS = []
for _l in range(NUM_LAYERS):
    _d = {}
    _d["wqkv"] = _off; _off += _round8(HIDDEN_DIM)   # (E, 3E)
    _d["wo"]   = _off; _off += _round8(HIDDEN_DIM)   # (E, E)
    _d["wf1"]  = _off; _off += _round8(HIDDEN_DIM)   # (E, FF)
    _d["wf2"]  = _off; _off += _round8(FF_DIM)       # (FF, E)
    W_LAYER_OFFS.append(_d)
W_OUT_OFF = _off; _off += 8                    # (1, E) final-layer weight (transposed)
W_ROWS = _off                                  # 520 rows -> ~266 KiB, trivially fits VMEM

# ---------- static layout of the packed vector slab: (VEC_ROWS, 128) f32, row indices ----------
VEC_B_IN = 0
VEC_B_OUT = 1
VEC_LAYER = []
_r = 2
for _l in range(NUM_LAYERS):
    VEC_LAYER.append({"bqkv": _r, "bo": _r + 1, "g1": _r + 2, "b1": _r + 3,
                      "g2": _r + 4, "b2": _r + 5, "bf2": _r + 6, "bf1": _r + 7})
    _r += 8
VEC_ROWS = _round8(_r)


def _layer_norm(x, gamma, beta):
    # PyTorch LayerNorm: biased variance over last dim, eps inside rsqrt.
    mean = jnp.mean(x, axis=-1, keepdims=True)
    var = jnp.mean((x - mean) ** 2, axis=-1, keepdims=True)
    return (x - mean) * lax.rsqrt(var + LN_EPS) * gamma + beta


# ----------------------------- fully fused forward kernel -----------------------------
def fused_transformer_kernel(x_ref, w_ref, vec_ref, o_ref, *, n_tok, batch):
    E, H, Dh, FF = HIDDEN_DIM, NUM_HEADS, HEAD_DIM, FF_DIM
    scale = 1.0 / math.sqrt(Dh)

    vecs = vec_ref[...]                                               # whole small-vector slab

    # ---- input Linear: (N, Din) @ (Din, E) ----
    x = x_ref[...]
    w_in = w_ref[W_IN_OFF:W_IN_OFF + INPUT_DIM, 0:E]
    h = jnp.dot(x, w_in, preferred_element_type=jnp.float32) + vecs[VEC_B_IN:VEC_B_IN + 1, 0:E]

    # Tokens are flattened in (seq, batch) order; attention only within the same batch.
    # Built from two 1-D batch-id vectors (no N^2 iotas / mods), hoisted out of the layer loop.
    row_b = lax.broadcasted_iota(jnp.int32, (n_tok, 1), 0) % batch
    col_b = lax.broadcasted_iota(jnp.int32, (1, n_tok), 1) % batch
    attn_bias = jnp.where(row_b == col_b, 0.0, -1e9).astype(jnp.float32)   # (N, N)

    for l in range(NUM_LAYERS):                      # static unroll (NUM_LAYERS = 2)
        off, vl = W_LAYER_OFFS[l], VEC_LAYER[l]
        wqkv = w_ref[off["wqkv"]:off["wqkv"] + E, 0:3 * E]            # (E, 3E)
        wo   = w_ref[off["wo"]:off["wo"] + E, 0:E]                    # (E, E)
        wf1  = w_ref[off["wf1"]:off["wf1"] + E, 0:FF]                 # (E, FF)
        wf2  = w_ref[off["wf2"]:off["wf2"] + FF, 0:E]                 # (FF, E)
        bqkv = vecs[vl["bqkv"]:vl["bqkv"] + 1, 0:3 * E]
        bo   = vecs[vl["bo"]:vl["bo"] + 1, 0:E]
        g1   = vecs[vl["g1"]:vl["g1"] + 1, 0:E]
        b1   = vecs[vl["b1"]:vl["b1"] + 1, 0:E]
        g2   = vecs[vl["g2"]:vl["g2"] + 1, 0:E]
        b2   = vecs[vl["b2"]:vl["b2"] + 1, 0:E]
        bf2  = vecs[vl["bf2"]:vl["bf2"] + 1, 0:E]
        bf1  = vecs[vl["bf1"]:vl["bf1"] + 1, 0:FF]

        # --- fused QKV projection: one lane-dense (N, E) @ (E, 3E) matmul ---
        qkv = jnp.dot(h, wqkv, preferred_element_type=jnp.float32) + bqkv          # (N, 3E)
        q = qkv[:, 0:E].reshape(n_tok, H, Dh).transpose(1, 0, 2)                   # (H, N, Dh)
        k = qkv[:, E:2 * E].reshape(n_tok, H, Dh).transpose(1, 0, 2)
        v = qkv[:, 2 * E:3 * E].reshape(n_tok, H, Dh).transpose(1, 0, 2)

        # --- per-head scores / softmax / context (head axis as batch dim) ---
        s = jnp.einsum('hnd,hmd->hnm', q, k, preferred_element_type=jnp.float32) * scale
        s = s + attn_bias
        s = s - jnp.max(s, axis=-1, keepdims=True)
        p = jnp.exp(s)
        p = p / jnp.sum(p, axis=-1, keepdims=True)                                 # exact softmax
        ctx = jnp.einsum('hnm,hmd->hnd', p, v, preferred_element_type=jnp.float32)  # (H, N, Dh)

        # --- fused out-projection: concat heads, one (N, E) @ (E, E) matmul ---
        attn = jnp.dot(ctx.transpose(1, 0, 2).reshape(n_tok, E), wo,
                       preferred_element_type=jnp.float32) + bo                    # (N, E)

        # TODO(synk): nn.Dropout(0.1) treated as eval-mode identity.
        h = _layer_norm(h + attn, g1, b1)

        # --- feed-forward: Linear(E,4E) -> ReLU -> Linear(4E,E) ---
        ff = jnp.dot(h, wf1, preferred_element_type=jnp.float32) + bf1
        ff = jnp.maximum(ff, 0.0)
        ff = jnp.dot(ff, wf2, preferred_element_type=jnp.float32) + bf2
        h = _layer_norm(h + ff, g2, b2)

    # ---- final Linear, computed transposed so the only HBM store is one (1, N) row ----
    w_out_t = w_ref[W_OUT_OFF:W_OUT_OFF + 1, 0:E]                     # (1, E)
    b_out = vecs[VEC_B_OUT:VEC_B_OUT + 1, 0:OUTPUT_DIM]               # (1, 1)
    logits = lax.dot_general(w_out_t, h, (((1,), (1,)), ((), ())),
                             preferred_element_type=jnp.float32) + b_out           # (1, N)

    # numerically-stable, exact sigmoid (stays strictly inside [0, 1], no inf intermediates)
    e = jnp.exp(-jnp.abs(logits))
    num = jnp.where(logits >= 0, 1.0, e)
    o_ref[...] = (num / (1.0 + e)).astype(o_ref.dtype)


def _full_spec(arr):
    zeros = (0,) * arr.ndim
    return pl.BlockSpec(arr.shape, lambda i, z=zeros: z)


def transformer_forward(x_sbd, packed):
    """x_sbd: (S, B, INPUT_DIM) -> (S, B) after sigmoid + squeeze (PyTorch semantics)."""
    S, B, Din = x_sbd.shape
    n_tok = S * B
    x2d = x_sbd.reshape(n_tok, Din)  # token order (s, b); attention masked to same-b tokens

    inputs = [x2d, packed["w_slab"], packed["vec_slab"]]   # 3 DMAs total

    out = pl.pallas_call(
        partial(fused_transformer_kernel, n_tok=n_tok, batch=B),
        out_shape=jax.ShapeDtypeStruct((1, n_tok), jnp.float32),
        grid=(1,),
        in_specs=[_full_spec(a) for a in inputs],
        out_specs=pl.BlockSpec((1, n_tok), lambda i: (0, 0)),
        compiler_params=pltpu.CompilerParams(dimension_semantics=("arbitrary",)),
    )(*inputs)

    return out.reshape(S, B)  # column t = s*B + b  ->  [s, b]; matches .squeeze() output


# ----------------------------- parameters -----------------------------
def init_params(key):
    """PyTorch-equivalent layout: wqkv = in_proj_weight.T (E, 3E), wo = out_proj.weight.T, etc."""
    def lin(k, din, dout, scale=0.05):
        kw, kb = jax.random.split(k)
        return (jax.random.normal(kw, (din, dout), jnp.float32) * scale,
                jax.random.normal(kb, (dout,), jnp.float32) * scale)

    keys = jax.random.split(key, 2 + NUM_LAYERS)
    params = {}
    params["w_in"], params["b_in"] = lin(keys[0], INPUT_DIM, HIDDEN_DIM)
    params["w_out"], params["b_out"] = lin(keys[1], HIDDEN_DIM, OUTPUT_DIM)
    layers = []
    for l in range(NUM_LAYERS):
        ks = jax.random.split(keys[2 + l], 4)
        wqkv, bqkv = lin(ks[0], HIDDEN_DIM, 3 * HIDDEN_DIM)   # in_proj_weight.T, in_proj_bias
        wo, bo = lin(ks[1], HIDDEN_DIM, HIDDEN_DIM)           # out_proj
        wf1, bf1 = lin(ks[2], HIDDEN_DIM, FF_DIM)
        wf2, bf2 = lin(ks[3], FF_DIM, HIDDEN_DIM)
        layers.append(dict(
            wqkv=wqkv, bqkv=bqkv, wo=wo, bo=bo,
            wf1=wf1, bf1=bf1, wf2=wf2, bf2=bf2,
            g1=jnp.ones((HIDDEN_DIM,), jnp.float32), b1=jnp.zeros((HIDDEN_DIM,), jnp.float32),
            g2=jnp.ones((HIDDEN_DIM,), jnp.float32), b2=jnp.zeros((HIDDEN_DIM,), jnp.float32),
        ))
    params["layers"] = layers
    return params


def pack_params(params):
    """Host-side repack of PyTorch-layout params into two contiguous (rows, 128) f32 slabs
    consumed by the fused kernel. Head split stays contiguous along the projection output dim,
    matching nn.MultiheadAttention (wqkv/bqkv are the transposed in_proj_weight/bias)."""
    E, FF = HIDDEN_DIM, FF_DIM
    W = jnp.zeros((W_ROWS, LANES), jnp.float32)
    V = jnp.zeros((VEC_ROWS, LANES), jnp.float32)

    W = W.at[W_IN_OFF:W_IN_OFF + INPUT_DIM, 0:E].set(params["w_in"])
    W = W.at[W_OUT_OFF, 0:E].set(params["w_out"][:, 0])           # (E,1) -> transposed row
    V = V.at[VEC_B_IN, 0:E].set(params["b_in"])
    V = V.at[VEC_B_OUT, 0:OUTPUT_DIM].set(params["b_out"])

    for l, lp in enumerate(params["layers"]):
        off, vl = W_LAYER_OFFS[l], VEC_LAYER[l]
        W = W.at[off["wqkv"]:off["wqkv"] + E, 0:3 * E].set(lp["wqkv"])
        W = W.at[off["wo"]:off["wo"] + E, 0:E].set(lp["wo"])
        W = W.at[off["wf1"]:off["wf1"] + E, 0:FF].set(lp["wf1"])
        W = W.at[off["wf2"]:off["wf2"] + FF, 0:E].set(lp["wf2"])
        V = V.at[vl["bqkv"], 0:3 * E].set(lp["bqkv"])
        V = V.at[vl["bo"], 0:E].set(lp["bo"])
        V = V.at[vl["g1"], 0:E].set(lp["g1"])
        V = V.at[vl["b1"], 0:E].set(lp["b1"])
        V = V.at[vl["g2"], 0:E].set(lp["g2"])
        V = V.at[vl["b2"], 0:E].set(lp["b2"])
        V = V.at[vl["bf2"], 0:E].set(lp["bf2"])
        V = V.at[vl["bf1"], 0:FF].set(lp["bf1"])

    return {"w_slab": W, "vec_slab": V}


if __name__ == "__main__":
    key = jax.random.PRNGKey(0)
    kx, kp = jax.random.split(key)
    S, B = 8, 2
    x = jax.random.normal(kx, (S, B, INPUT_DIM), jnp.float32)
    params = init_params(kp)
    packed = pack_params(params)

    y = transformer_forward(x, packed)
    jax.block_until_ready(y)
    assert y.shape == (S, B), y.shape
    assert bool(jnp.all(jnp.isfinite(y)))
    assert bool(jnp.all((y >= 0.0) & (y <= 1.0)))
    print("KERNEL_OK")
</pallas_src>

<mosaic_0001>
module attributes {stable_mosaic.version = 11 : i64} {
  func.func @fused_transformer_kernel(%arg0: i32, %arg1: memref<16x64xf32, #tpu.memory_space<vmem>>, %arg2: memref<520x128xf32, #tpu.memory_space<vmem>>, %arg3: memref<24x128xf32, #tpu.memory_space<vmem>>, %arg4: memref<1x16xf32, #tpu.memory_space<vmem>>) attributes {dimension_semantics = [#tpu.dimension_semantics<arbitrary>], iteration_bounds = array<i64: 1>, scalar_prefetch = 0 : i64, scratch_operands = 0 : i64, tpu.core_type = #tpu.core_type<tc>, window_params = [{pipeline_mode = #tpu.pipeline_mode<synchronous>, transform_indices = @transform_0, window_bounds = array<i64: 16, 64>}, {pipeline_mode = #tpu.pipeline_mode<synchronous>, transform_indices = @transform_1, window_bounds = array<i64: 520, 128>}, {pipeline_mode = #tpu.pipeline_mode<synchronous>, transform_indices = @transform_2, window_bounds = array<i64: 24, 128>}, {pipeline_mode = #tpu.pipeline_mode<synchronous>, transform_indices = @transform_3, window_bounds = array<i64: 1, 16>}]} {
    %c0 = arith.constant 0 : index
    %c0_0 = arith.constant 0 : index
    %0 = vector.load %arg3[%c0, %c0_0] : memref<24x128xf32, #tpu.memory_space<vmem>>, vector<24x128xf32>
    %c0_1 = arith.constant 0 : index
    %c0_2 = arith.constant 0 : index
    %1 = vector.load %arg1[%c0_1, %c0_2] : memref<16x64xf32, #tpu.memory_space<vmem>>, vector<16x64xf32>
    %c0_3 = arith.constant 0 : index
    %c0_4 = arith.constant 0 : index
    %2 = vector.load %arg2[%c0_3, %c0_4] : memref<520x128xf32, #tpu.memory_space<vmem>>, vector<64x32xf32>
    %cst = arith.constant dense<0.000000e+00> : vector<16x32xf32>
    %3 = tpu.matmul %1, %2, %cst {dimension_numbers = #tpu.dot_dimension_numbers<[1], [0], [0], [1], [0, 0, 1, 1], [], []>} : vector<16x64xf32>, vector<64x32xf32>, vector<16x32xf32> -> vector<16x32xf32>
    %4 = vector.extract_strided_slice %0 {offsets = [0, 0], sizes = [1, 32], strides = [1, 1]} : vector<24x128xf32> to vector<1x32xf32>
    %5 = vector.broadcast %4 : vector<1x32xf32> to vector<16x32xf32>
    %6 = arith.addf %3, %5 : vector<16x32xf32>
    %7 = tpu.iota {dimensions = array<i32: 0>} : vector<16x1xi32>
    %c2_i32 = arith.constant 2 : i32
    %c0_i32 = arith.constant 0 : i32
    %8 = arith.cmpi eq, %c2_i32, %c0_i32 : i32
    %c1_i32 = arith.constant 1 : i32
    %9 = arith.select %8, %c1_i32, %c2_i32 : i32
    %10 = vector.broadcast %9 : i32 to vector<16x1xi32>
    %11 = arith.remsi %7, %10 : vector<16x1xi32>
    %c0_i32_5 = arith.constant 0 : i32
    %12 = vector.broadcast %c0_i32_5 : i32 to vector<16x1xi32>
    %13 = arith.cmpi ne, %11, %12 : vector<16x1xi32>
    %c0_i32_6 = arith.constant 0 : i32
    %14 = vector.broadcast %c0_i32_6 : i32 to vector<16x1xi32>
    %15 = arith.cmpi slt, %11, %14 : vector<16x1xi32>
    %c0_i32_7 = arith.constant 0 : i32
    %16 = arith.cmpi slt, %9, %c0_i32_7 : i32
    %17 = vector.broadcast %16 : i1 to vector<16x1xi1>
    %18 = vector.broadcast %17 : vector<16x1xi1> to vector<16x1xi1>
    %19 = arith.xori %15, %18 : vector<16x1xi1>
    %20 = arith.andi %19, %13 : vector<16x1xi1>
    %21 = vector.broadcast %9 : i32 to vector<16x1xi32>
    %22 = arith.addi %11, %21 : vector<16x1xi32>
    %23 = arith.select %20, %22, %11 : vector<16x1xi1>, vector<16x1xi32>
    %24 = tpu.iota {dimensions = array<i32: 1>} : vector<1x16xi32>
    %c2_i32_8 = arith.constant 2 : i32
    %c0_i32_9 = arith.constant 0 : i32
    %25 = arith.cmpi eq, %c2_i32_8, %c0_i32_9 : i32
    %c1_i32_10 = arith.constant 1 : i32
    %26 = arith.select %25, %c1_i32_10, %c2_i32_8 : i32
    %27 = vector.broadcast %26 : i32 to vector<1x16xi32>
    %28 = arith.remsi %24, %27 : vector<1x16xi32>
    %c0_i32_11 = arith.constant 0 : i32
    %29 = vector.broadcast %c0_i32_11 : i32 to vector<1x16xi32>
    %30 = arith.cmpi ne, %28, %29 : vector<1x16xi32>
    %c0_i32_12 = arith.constant 0 : i32
    %31 = vector.broadcast %c0_i32_12 : i32 to vector<1x16xi32>
    %32 = arith.cmpi slt, %28, %31 : vector<1x16xi32>
    %c0_i32_13 = arith.constant 0 : i32
    %33 = arith.cmpi slt, %26, %c0_i32_13 : i32
    %34 = vector.broadcast %33 : i1 to vector<1x16xi1>
    %35 = vector.broadcast %34 : vector<1x16xi1> to vector<1x16xi1>
    %36 = arith.xori %32, %35 : vector<1x16xi1>
    %37 = arith.andi %36, %30 : vector<1x16xi1>
    %38 = vector.broadcast %26 : i32 to vector<1x16xi32>
    %39 = arith.addi %28, %38 : vector<1x16xi32>
    %40 = arith.select %37, %39, %28 : vector<1x16xi1>, vector<1x16xi32>
    %41 = vector.broadcast %23 : vector<16x1xi32> to vector<16x16xi32>
    %42 = vector.broadcast %40 : vector<1x16xi32> to vector<16x16xi32>
    %43 = arith.cmpi eq, %41, %42 : vector<16x16xi32>
    %cst_14 = arith.constant 0.000000e+00 : f32
    %cst_15 = arith.constant -1.000000e+09 : f32
    %44 = vector.broadcast %cst_14 : f32 to vector<16x16xf32>
    %45 = vector.broadcast %cst_15 : f32 to vector<16x16xf32>
    %46 = arith.select %43, %44, %45 : vector<16x16xi1>, vector<16x16xf32>
    %c64 = arith.constant 64 : index
    %c0_16 = arith.constant 0 : index
    %47 = vector.load %arg2[%c64, %c0_16] : memref<520x128xf32, #tpu.memory_space<vmem>>, vector<32x96xf32>
    %c96 = arith.constant 96 : index
    %c0_17 = arith.constant 0 : index
    %48 = vector.load %arg2[%c96, %c0_17] : memref<520x128xf32, #tpu.memory_space<vmem>>, vector<32x32xf32>
    %c128 = arith.constant 128 : index
    %c0_18 = arith.constant 0 : index
    %49 = vector.load %arg2[%c128, %c0_18] : memref<520x128xf32, #tpu.memory_space<vmem>>, vector<32x128xf32>
    %c160 = arith.constant 160 : index
    %c0_19 = arith.constant 0 : index
    %50 = vector.load %arg2[%c160, %c0_19] : memref<520x128xf32, #tpu.memory_space<vmem>>, vector<128x32xf32>
    %51 = vector.extract_strided_slice %0 {offsets = [2, 0], sizes = [1, 96], strides = [1, 1]} : vector<24x128xf32> to vector<1x96xf32>
    %52 = vector.extract_strided_slice %0 {offsets = [3, 0], sizes = [1, 32], strides = [1, 1]} : vector<24x128xf32> to vector<1x32xf32>
    %53 = vector.extract_strided_slice %0 {offsets = [4, 0], sizes = [1, 32], strides = [1, 1]} : vector<24x128xf32> to vector<1x32xf32>
    %54 = vector.extract_strided_slice %0 {offsets = [5, 0], sizes = [1, 32], strides = [1, 1]} : vector<24x128xf32> to vector<1x32xf32>
    %55 = vector.extract_strided_slice %0 {offsets = [6, 0], sizes = [1, 32], strides = [1, 1]} : vector<24x128xf32> to vector<1x32xf32>
    %56 = vector.extract_strided_slice %0 {offsets = [7, 0], sizes = [1, 32], strides = [1, 1]} : vector<24x128xf32> to vector<1x32xf32>
    %57 = vector.extract_strided_slice %0 {offsets = [8, 0], sizes = [1, 32], strides = [1, 1]} : vector<24x128xf32> to vector<1x32xf32>
    %58 = vector.extract_strided_slice %0 {offsets = [9, 0], sizes = [1, 128], strides = [1, 1]} : vector<24x128xf32> to vector<1x128xf32>
    %cst_20 = arith.constant dense<0.000000e+00> : vector<16x96xf32>
    %59 = tpu.matmul %6, %47, %cst_20 {dimension_numbers = #tpu.dot_dimension_numbers<[1], [0], [0], [1], [0, 0, 1, 1], [], []>} : vector<16x32xf32>, vector<32x96xf32>, vector<16x96xf32> -> vector<16x96xf32>
    %60 = vector.broadcast %51 : vector<1x96xf32> to vector<16x96xf32>
    %61 = arith.addf %59, %60 : vector<16x96xf32>
    %62 = vector.extract_strided_slice %61 {offsets = [0, 0], sizes = [16, 32], strides = [1, 1]} : vector<16x96xf32> to vector<16x32xf32>
    %63 = vector.shape_cast %62 : vector<16x32xf32> to vector<16x4x8xf32>
    %64 = tpu.transpose %63, [1, 0, 2] : vector<16x4x8xf32> -> vector<4x16x8xf32>
    %65 = vector.extract_strided_slice %61 {offsets = [0, 32], sizes = [16, 32], strides = [1, 1]} : vector<16x96xf32> to vector<16x32xf32>
    %66 = vector.shape_cast %65 : vector<16x32xf32> to vector<16x4x8xf32>
    %67 = tpu.transpose %66, [1, 0, 2] : vector<16x4x8xf32> -> vector<4x16x8xf32>
    %68 = vector.extract_strided_slice %61 {offsets = [0, 64], sizes = [16, 32], strides = [1, 1]} : vector<16x96xf32> to vector<16x32xf32>
    %69 = vector.shape_cast %68 : vector<16x32xf32> to vector<16x4x8xf32>
    %70 = tpu.transpose %69, [1, 0, 2] : vector<16x4x8xf32> -> vector<4x16x8xf32>
    "tpu.trace_start"() <{level = 10 : i32, message = "hnd,hmd->hnm"}> : () -> ()
    %cst_21 = arith.constant dense<0.000000e+00> : vector<4x16x16xf32>
    %71 = tpu.matmul %64, %67, %cst_21 {dimension_numbers = #tpu.dot_dimension_numbers<[2], [2], [1], [1], [0, 0, 0, 1, 1, 1], [0], [0]>} : vector<4x16x8xf32>, vector<4x16x8xf32>, vector<4x16x16xf32> -> vector<4x16x16xf32>
    "tpu.trace_stop"() : () -> ()
    %cst_22 = arith.constant 0.353553385 : f32
    %72 = vector.broadcast %cst_22 : f32 to vector<4x16x16xf32>
    %73 = arith.mulf %71, %72 : vector<4x16x16xf32>
    %74 = vector.shape_cast %46 : vector<16x16xf32> to vector<1x16x16xf32>
    %75 = vector.broadcast %74 : vector<1x16x16xf32> to vector<4x16x16xf32>
    %76 = arith.addf %73, %75 : vector<4x16x16xf32>
    %cst_23 = arith.constant dense<0xFF800000> : vector<4x16xf32>
    %77 = vector.multi_reduction <maximumf>, %76, %cst_23 [2] : vector<4x16x16xf32> to vector<4x16xf32>
    %78 = vector.shape_cast %77 : vector<4x16xf32> to vector<4x16x1xf32>
    %79 = vector.broadcast %78 : vector<4x16x1xf32> to vector<4x16x16xf32>
    %80 = arith.subf %76, %79 : vector<4x16x16xf32>
    %81 = math.exp %80 : vector<4x16x16xf32>
    %cst_24 = arith.constant dense<0.000000e+00> : vector<4x16xf32>
    %82 = vector.multi_reduction <add>, %81, %cst_24 [2] : vector<4x16x16xf32> to vector<4x16xf32>
    %83 = vector.shape_cast %82 : vector<4x16xf32> to vector<4x16x1xf32>
    %84 = vector.broadcast %83 : vector<4x16x1xf32> to vector<4x16x16xf32>
    %85 = arith.divf %81, %84 : vector<4x16x16xf32>
    "tpu.trace_start"() <{level = 10 : i32, message = "hnm,hmd->hnd"}> : () -> ()
    %cst_25 = arith.constant dense<0.000000e+00> : vector<4x16x8xf32>
    %86 = tpu.matmul %85, %70, %cst_25 {dimension_numbers = #tpu.dot_dimension_numbers<[2], [1], [1], [2], [0, 0, 0, 1, 1, 2], [0], [0]>} : vector<4x16x16xf32>, vector<4x16x8xf32>, vector<4x16x8xf32> -> vector<4x16x8xf32>
    "tpu.trace_stop"() : () -> ()
    %87 = tpu.transpose %86, [1, 0, 2] : vector<4x16x8xf32> -> vector<16x4x8xf32>
    %88 = vector.shape_cast %87 : vector<16x4x8xf32> to vector<16x32xf32>
    %cst_26 = arith.constant dense<0.000000e+00> : vector<16x32xf32>
    %89 = tpu.matmul %88, %48, %cst_26 {dimension_numbers = #tpu.dot_dimension_numbers<[1], [0], [0], [1], [0, 0, 1, 1], [], []>} : vector<16x32xf32>, vector<32x32xf32>, vector<16x32xf32> -> vector<16x32xf32>
    %90 = vector.broadcast %52 : vector<1x32xf32> to vector<16x32xf32>
    %91 = arith.addf %89, %90 : vector<16x32xf32>
    %92 = arith.addf %6, %91 : vector<16x32xf32>
    %cst_27 = arith.constant dense<0.000000e+00> : vector<16xf32>
    %93 = vector.multi_reduction <add>, %92, %cst_27 [1] : vector<16x32xf32> to vector<16xf32>
    %94 = vector.shape_cast %93 : vector<16xf32> to vector<16x1xf32>
    %cst_28 = arith.constant 3.200000e+01 : f32
    %95 = vector.broadcast %cst_28 : f32 to vector<16x1xf32>
    %96 = arith.divf %94, %95 : vector<16x1xf32>
    %97 = vector.broadcast %96 : vector<16x1xf32> to vector<16x32xf32>
    %98 = arith.subf %92, %97 : vector<16x32xf32>
    %99 = arith.mulf %98, %98 : vector<16x32xf32>
    %cst_29 = arith.constant dense<0.000000e+00> : vector<16xf32>
    %100 = vector.multi_reduction <add>, %99, %cst_29 [1] : vector<16x32xf32> to vector<16xf32>
    %101 = vector.shape_cast %100 : vector<16xf32> to vector<16x1xf32>
    %cst_30 = arith.constant 3.200000e+01 : f32
    %102 = vector.broadcast %cst_30 : f32 to vector<16x1xf32>
    %103 = arith.divf %101, %102 : vector<16x1xf32>
    %104 = vector.broadcast %96 : vector<16x1xf32> to vector<16x32xf32>
    %105 = arith.subf %92, %104 : vector<16x32xf32>
    %cst_31 = arith.constant 9.99999974E-6 : f32
    %106 = vector.broadcast %cst_31 : f32 to vector<16x1xf32>
    %107 = arith.addf %103, %106 : vector<16x1xf32>
    %108 = math.rsqrt %107 : vector<16x1xf32>
    %109 = vector.broadcast %108 : vector<16x1xf32> to vector<16x32xf32>
    %110 = arith.mulf %105, %109 : vector<16x32xf32>
    %111 = vector.broadcast %53 : vector<1x32xf32> to vector<16x32xf32>
    %112 = arith.mulf %110, %111 : vector<16x32xf32>
    %113 = vector.broadcast %54 : vector<1x32xf32> to vector<16x32xf32>
    %114 = arith.addf %112, %113 : vector<16x32xf32>
    %cst_32 = arith.constant dense<0.000000e+00> : vector<16x128xf32>
    %115 = tpu.matmul %114, %49, %cst_32 {dimension_numbers = #tpu.dot_dimension_numbers<[1], [0], [0], [1], [0, 0, 1, 1], [], []>} : vector<16x32xf32>, vector<32x128xf32>, vector<16x128xf32> -> vector<16x128xf32>
    %116 = vector.broadcast %58 : vector<1x128xf32> to vector<16x128xf32>
    %117 = arith.addf %115, %116 : vector<16x128xf32>
    %cst_33 = arith.constant 0.000000e+00 : f32
    %118 = vector.broadcast %cst_33 : f32 to vector<16x128xf32>
    %119 = arith.maximumf %117, %118 : vector<16x128xf32>
    %cst_34 = arith.constant dense<0.000000e+00> : vector<16x32xf32>
    %120 = tpu.matmul %119, %50, %cst_34 {dimension_numbers = #tpu.dot_dimension_numbers<[1], [0], [0], [1], [0, 0, 1, 1], [], []>} : vector<16x128xf32>, vector<128x32xf32>, vector<16x32xf32> -> vector<16x32xf32>
    %121 = vector.broadcast %57 : vector<1x32xf32> to vector<16x32xf32>
    %122 = arith.addf %120, %121 : vector<16x32xf32>
    %123 = arith.addf %114, %122 : vector<16x32xf32>
    %cst_35 = arith.constant dense<0.000000e+00> : vector<16xf32>
    %124 = vector.multi_reduction <add>, %123, %cst_35 [1] : vector<16x32xf32> to vector<16xf32>
    %125 = vector.shape_cast %124 : vector<16xf32> to vector<16x1xf32>
    %cst_36 = arith.constant 3.200000e+01 : f32
    %126 = vector.broadcast %cst_36 : f32 to vector<16x1xf32>
    %127 = arith.divf %125, %126 : vector<16x1xf32>
    %128 = vector.broadcast %127 : vector<16x1xf32> to vector<16x32xf32>
    %129 = arith.subf %123, %128 : vector<16x32xf32>
    %130 = arith.mulf %129, %129 : vector<16x32xf32>
    %cst_37 = arith.constant dense<0.000000e+00> : vector<16xf32>
    %131 = vector.multi_reduction <add>, %130, %cst_37 [1] : vector<16x32xf32> to vector<16xf32>
    %132 = vector.shape_cast %131 : vector<16xf32> to vector<16x1xf32>
    %cst_38 = arith.constant 3.200000e+01 : f32
    %133 = vector.broadcast %cst_38 : f32 to vector<16x1xf32>
    %134 = arith.divf %132, %133 : vector<16x1xf32>
    %135 = vector.broadcast %127 : vector<16x1xf32> to vector<16x32xf32>
    %136 = arith.subf %123, %135 : vector<16x32xf32>
    %cst_39 = arith.constant 9.99999974E-6 : f32
    %137 = vector.broadcast %cst_39 : f32 to vector<16x1xf32>
    %138 = arith.addf %134, %137 : vector<16x1xf32>
    %139 = math.rsqrt %138 : vector<16x1xf32>
    %140 = vector.broadcast %139 : vector<16x1xf32> to vector<16x32xf32>
    %141 = arith.mulf %136, %140 : vector<16x32xf32>
    %142 = vector.broadcast %55 : vector<1x32xf32> to vector<16x32xf32>
    %143 = arith.mulf %141, %142 : vector<16x32xf32>
    %144 = vector.broadcast %56 : vector<1x32xf32> to vector<16x32xf32>
    %145 = arith.addf %143, %144 : vector<16x32xf32>
    %c288 = arith.constant 288 : index
    %c0_40 = arith.constant 0 : index
    %146 = vector.load %arg2[%c288, %c0_40] : memref<520x128xf32, #tpu.memory_space<vmem>>, vector<32x96xf32>
    %c320 = arith.constant 320 : index
    %c0_41 = arith.constant 0 : index
    %147 = vector.load %arg2[%c320, %c0_41] : memref<520x128xf32, #tpu.memory_space<vmem>>, vector<32x32xf32>
    %c352 = arith.constant 352 : index
    %c0_42 = arith.constant 0 : index
    %148 = vector.load %arg2[%c352, %c0_42] : memref<520x128xf32, #tpu.memory_space<vmem>>, vector<32x128xf32>
    %c384 = arith.constant 384 : index
    %c0_43 = arith.constant 0 : index
    %149 = vector.load %arg2[%c384, %c0_43] : memref<520x128xf32, #tpu.memory_space<vmem>>, vector<128x32xf32>
    %150 = vector.extract_strided_slice %0 {offsets = [10, 0], sizes = [1, 96], strides = [1, 1]} : vector<24x128xf32> to vector<1x96xf32>
    %151 = vector.extract_strided_slice %0 {offsets = [11, 0], sizes = [1, 32], strides = [1, 1]} : vector<24x128xf32> to vector<1x32xf32>
    %152 = vector.extract_strided_slice %0 {offsets = [12, 0], sizes = [1, 32], strides = [1, 1]} : vector<24x128xf32> to vector<1x32xf32>
    %153 = vector.extract_strided_slice %0 {offsets = [13, 0], sizes = [1, 32], strides = [1, 1]} : vector<24x128xf32> to vector<1x32xf32>
    %154 = vector.extract_strided_slice %0 {offsets = [14, 0], sizes = [1, 32], strides = [1, 1]} : vector<24x128xf32> to vector<1x32xf32>
    %155 = vector.extract_strided_slice %0 {offsets = [15, 0], sizes = [1, 32], strides = [1, 1]} : vector<24x128xf32> to vector<1x32xf32>
    %156 = vector.extract_strided_slice %0 {offsets = [16, 0], sizes = [1, 32], strides = [1, 1]} : vector<24x128xf32> to vector<1x32xf32>
    %157 = vector.extract_strided_slice %0 {offsets = [17, 0], sizes = [1, 128], strides = [1, 1]} : vector<24x128xf32> to vector<1x128xf32>
    %cst_44 = arith.constant dense<0.000000e+00> : vector<16x96xf32>
    %158 = tpu.matmul %145, %146, %cst_44 {dimension_numbers = #tpu.dot_dimension_numbers<[1], [0], [0], [1], [0, 0, 1, 1], [], []>} : vector<16x32xf32>, vector<32x96xf32>, vector<16x96xf32> -> vector<16x96xf32>
    %159 = vector.broadcast %150 : vector<1x96xf32> to vector<16x96xf32>
    %160 = arith.addf %158, %159 : vector<16x96xf32>
    %161 = vector.extract_strided_slice %160 {offsets = [0, 0], sizes = [16, 32], strides = [1, 1]} : vector<16x96xf32> to vector<16x32xf32>
    %162 = vector.shape_cast %161 : vector<16x32xf32> to vector<16x4x8xf32>
    %163 = tpu.transpose %162, [1, 0, 2] : vector<16x4x8xf32> -> vector<4x16x8xf32>
    %164 = vector.extract_strided_slice %160 {offsets = [0, 32], sizes = [16, 32], strides = [1, 1]} : vector<16x96xf32> to vector<16x32xf32>
    %165 = vector.shape_cast %164 : vector<16x32xf32> to vector<16x4x8xf32>
    %166 = tpu.transpose %165, [1, 0, 2] : vector<16x4x8xf32> -> vector<4x16x8xf32>
    %167 = vector.extract_strided_slice %160 {offsets = [0, 64], sizes = [16, 32], strides = [1, 1]} : vector<16x96xf32> to vector<16x32xf32>
    %168 = vector.shape_cast %167 : vector<16x32xf32> to vector<16x4x8xf32>
    %169 = tpu.transpose %168, [1, 0, 2] : vector<16x4x8xf32> -> vector<4x16x8xf32>
    "tpu.trace_start"() <{level = 10 : i32, message = "hnd,hmd->hnm"}> : () -> ()
    %cst_45 = arith.constant dense<0.000000e+00> : vector<4x16x16xf32>
    %170 = tpu.matmul %163, %166, %cst_45 {dimension_numbers = #tpu.dot_dimension_numbers<[2], [2], [1], [1], [0, 0, 0, 1, 1, 1], [0], [0]>} : vector<4x16x8xf32>, vector<4x16x8xf32>, vector<4x16x16xf32> -> vector<4x16x16xf32>
    "tpu.trace_stop"() : () -> ()
    %cst_46 = arith.constant 0.353553385 : f32
    %171 = vector.broadcast %cst_46 : f32 to vector<4x16x16xf32>
    %172 = arith.mulf %170, %171 : vector<4x16x16xf32>
    %173 = vector.shape_cast %46 : vector<16x16xf32> to vector<1x16x16xf32>
    %174 = vector.broadcast %173 : vector<1x16x16xf32> to vector<4x16x16xf32>
    %175 = arith.addf %172, %174 : vector<4x16x16xf32>
    %cst_47 = arith.constant dense<0xFF800000> : vector<4x16xf32>
    %176 = vector.multi_reduction <maximumf>, %175, %cst_47 [2] : vector<4x16x16xf32> to vector<4x16xf32>
    %177 = vector.shape_cast %176 : vector<4x16xf32> to vector<4x16x1xf32>
    %178 = vector.broadcast %177 : vector<4x16x1xf32> to vector<4x16x16xf32>
    %179 = arith.subf %175, %178 : vector<4x16x16xf32>
    %180 = math.exp %179 : vector<4x16x16xf32>
    %cst_48 = arith.constant dense<0.000000e+00> : vector<4x16xf32>
    %181 = vector.multi_reduction <add>, %180, %cst_48 [2] : vector<4x16x16xf32> to vector<4x16xf32>
    %182 = vector.shape_cast %181 : vector<4x16xf32> to vector<4x16x1xf32>
    %183 = vector.broadcast %182 : vector<4x16x1xf32> to vector<4x16x16xf32>
    %184 = arith.divf %180, %183 : vector<4x16x16xf32>
    "tpu.trace_start"() <{level = 10 : i32, message = "hnm,hmd->hnd"}> : () -> ()
    %cst_49 = arith.constant dense<0.000000e+00> : vector<4x16x8xf32>
    %185 = tpu.matmul %184, %169, %cst_49 {dimension_numbers = #tpu.dot_dimension_numbers<[2], [1], [1], [2], [0, 0, 0, 1, 1, 2], [0], [0]>} : vector<4x16x16xf32>, vector<4x16x8xf32>, vector<4x16x8xf32> -> vector<4x16x8xf32>
    "tpu.trace_stop"() : () -> ()
    %186 = tpu.transpose %185, [1, 0, 2] : vector<4x16x8xf32> -> vector<16x4x8xf32>
    %187 = vector.shape_cast %186 : vector<16x4x8xf32> to vector<16x32xf32>
    %cst_50 = arith.constant dense<0.000000e+00> : vector<16x32xf32>
    %188 = tpu.matmul %187, %147, %cst_50 {dimension_numbers = #tpu.dot_dimension_numbers<[1], [0], [0], [1], [0, 0, 1, 1], [], []>} : vector<16x32xf32>, vector<32x32xf32>, vector<16x32xf32> -> vector<16x32xf32>
    %189 = vector.broadcast %151 : vector<1x32xf32> to vector<16x32xf32>
    %190 = arith.addf %188, %189 : vector<16x32xf32>
    %191 = arith.addf %145, %190 : vector<16x32xf32>
    %cst_51 = arith.constant dense<0.000000e+00> : vector<16xf32>
    %192 = vector.multi_reduction <add>, %191, %cst_51 [1] : vector<16x32xf32> to vector<16xf32>
    %193 = vector.shape_cast %192 : vector<16xf32> to vector<16x1xf32>
    %cst_52 = arith.constant 3.200000e+01 : f32
    %194 = vector.broadcast %cst_52 : f32 to vector<16x1xf32>
    %195 = arith.divf %193, %194 : vector<16x1xf32>
    %196 = vector.broadcast %195 : vector<16x1xf32> to vector<16x32xf32>
    %197 = arith.subf %191, %196 : vector<16x32xf32>
    %198 = arith.mulf %197, %197 : vector<16x32xf32>
    %cst_53 = arith.constant dense<0.000000e+00> : vector<16xf32>
    %199 = vector.multi_reduction <add>, %198, %cst_53 [1] : vector<16x32xf32> to vector<16xf32>
    %200 = vector.shape_cast %199 : vector<16xf32> to vector<16x1xf32>
    %cst_54 = arith.constant 3.200000e+01 : f32
    %201 = vector.broadcast %cst_54 : f32 to vector<16x1xf32>
    %202 = arith.divf %200, %201 : vector<16x1xf32>
    %203 = vector.broadcast %195 : vector<16x1xf32> to vector<16x32xf32>
    %204 = arith.subf %191, %203 : vector<16x32xf32>
    %cst_55 = arith.constant 9.99999974E-6 : f32
    %205 = vector.broadcast %cst_55 : f32 to vector<16x1xf32>
    %206 = arith.addf %202, %205 : vector<16x1xf32>
    %207 = math.rsqrt %206 : vector<16x1xf32>
    %208 = vector.broadcast %207 : vector<16x1xf32> to vector<16x32xf32>
    %209 = arith.mulf %204, %208 : vector<16x32xf32>
    %210 = vector.broadcast %152 : vector<1x32xf32> to vector<16x32xf32>
    %211 = arith.mulf %209, %210 : vector<16x32xf32>
    %212 = vector.broadcast %153 : vector<1x32xf32> to vector<16x32xf32>
    %213 = arith.addf %211, %212 : vector<16x32xf32>
    %cst_56 = arith.constant dense<0.000000e+00> : vector<16x128xf32>
    %214 = tpu.matmul %213, %148, %cst_56 {dimension_numbers = #tpu.dot_dimension_numbers<[1], [0], [0], [1], [0, 0, 1, 1], [], []>} : vector<16x32xf32>, vector<32x128xf32>, vector<16x128xf32> -> vector<16x128xf32>
    %215 = vector.broadcast %157 : vector<1x128xf32> to vector<16x128xf32>
    %216 = arith.addf %214, %215 : vector<16x128xf32>
    %cst_57 = arith.constant 0.000000e+00 : f32
    %217 = vector.broadcast %cst_57 : f32 to vector<16x128xf32>
    %218 = arith.maximumf %216, %217 : vector<16x128xf32>
    %cst_58 = arith.constant dense<0.000000e+00> : vector<16x32xf32>
    %219 = tpu.matmul %218, %149, %cst_58 {dimension_numbers = #tpu.dot_dimension_numbers<[1], [0], [0], [1], [0, 0, 1, 1], [], []>} : vector<16x128xf32>, vector<128x32xf32>, vector<16x32xf32> -> vector<16x32xf32>
    %220 = vector.broadcast %156 : vector<1x32xf32> to vector<16x32xf32>
    %221 = arith.addf %219, %220 : vector<16x32xf32>
    %222 = arith.addf %213, %221 : vector<16x32xf32>
    %cst_59 = arith.constant dense<0.000000e+00> : vector<16xf32>
    %223 = vector.multi_reduction <add>, %222, %cst_59 [1] : vector<16x32xf32> to vector<16xf32>
    %224 = vector.shape_cast %223 : vector<16xf32> to vector<16x1xf32>
    %cst_60 = arith.constant 3.200000e+01 : f32
    %225 = vector.broadcast %cst_60 : f32 to vector<16x1xf32>
    %226 = arith.divf %224, %225 : vector<16x1xf32>
    %227 = vector.broadcast %226 : vector<16x1xf32> to vector<16x32xf32>
    %228 = arith.subf %222, %227 : vector<16x32xf32>
    %229 = arith.mulf %228, %228 : vector<16x32xf32>
    %cst_61 = arith.constant dense<0.000000e+00> : vector<16xf32>
    %230 = vector.multi_reduction <add>, %229, %cst_61 [1] : vector<16x32xf32> to vector<16xf32>
    %231 = vector.shape_cast %230 : vector<16xf32> to vector<16x1xf32>
    %cst_62 = arith.constant 3.200000e+01 : f32
    %232 = vector.broadcast %cst_62 : f32 to vector<16x1xf32>
    %233 = arith.divf %231, %232 : vector<16x1xf32>
    %234 = vector.broadcast %226 : vector<16x1xf32> to vector<16x32xf32>
    %235 = arith.subf %222, %234 : vector<16x32xf32>
    %cst_63 = arith.constant 9.99999974E-6 : f32
    %236 = vector.broadcast %cst_63 : f32 to vector<16x1xf32>
    %237 = arith.addf %233, %236 : vector<16x1xf32>
    %238 = math.rsqrt %237 : vector<16x1xf32>
    %239 = vector.broadcast %238 : vector<16x1xf32> to vector<16x32xf32>
    %240 = arith.mulf %235, %239 : vector<16x32xf32>
    %241 = vector.broadcast %154 : vector<1x32xf32> to vector<16x32xf32>
    %242 = arith.mulf %240, %241 : vector<16x32xf32>
    %243 = vector.broadcast %155 : vector<1x32xf32> to vector<16x32xf32>
    %244 = arith.addf %242, %243 : vector<16x32xf32>
    %c512 = arith.constant 512 : index
    %c0_64 = arith.constant 0 : index
    %245 = vector.load %arg2[%c512, %c0_64] : memref<520x128xf32, #tpu.memory_space<vmem>>, vector<1x32xf32>
    %246 = vector.extract_strided_slice %0 {offsets = [1, 0], sizes = [1, 1], strides = [1, 1]} : vector<24x128xf32> to vector<1x1xf32>
    %cst_65 = arith.constant dense<0.000000e+00> : vector<1x16xf32>
    %247 = tpu.matmul %245, %244, %cst_65 {dimension_numbers = #tpu.dot_dimension_numbers<[1], [1], [0], [0], [0, 0, 1, 0], [], []>} : vector<1x32xf32>, vector<16x32xf32>, vector<1x16xf32> -> vector<1x16xf32>
    %248 = vector.broadcast %246 : vector<1x1xf32> to vector<1x16xf32>
    %249 = arith.addf %247, %248 : vector<1x16xf32>
    %250 = math.absf %249 : vector<1x16xf32>
    %cst_66 = arith.constant 0.000000e+00 : f32
    %251 = vector.broadcast %cst_66 : f32 to vector<1x16xf32>
    %252 = arith.subf %251, %250 : vector<1x16xf32>
    %253 = math.exp %252 : vector<1x16xf32>
    %cst_67 = arith.constant 0.000000e+00 : f32
    %254 = vector.broadcast %cst_67 : f32 to vector<1x16xf32>
    %255 = arith.cmpf oge, %249, %254 : vector<1x16xf32>
    %cst_68 = arith.constant 1.000000e+00 : f32
    %256 = vector.broadcast %cst_68 : f32 to vector<1x16xf32>
    %257 = arith.select %255, %256, %253 : vector<1x16xi1>, vector<1x16xf32>
    %cst_69 = arith.constant 1.000000e+00 : f32
    %258 = vector.broadcast %cst_69 : f32 to vector<1x16xf32>
    %259 = arith.addf %258, %253 : vector<1x16xf32>
    %260 = arith.divf %257, %259 : vector<1x16xf32>
    %c0_70 = arith.constant 0 : index
    %c0_71 = arith.constant 0 : index
    %261 = vector.load %arg4[%c0_70, %c0_71] : memref<1x16xf32, #tpu.memory_space<vmem>>, vector<1x16xf32>
    tpu.vector_store %arg4[%c0_70, %c0_71], %260 {strides = array<i32>} : memref<1x16xf32, #tpu.memory_space<vmem>>, vector<1x16xf32>,
    return
  }
  func.func @transform_0(%arg0: i32) -> (i32, i32) {
    %c0_i32 = arith.constant 0 : i32
    %c0_i32_0 = arith.constant 0 : i32
    %c0_i32_1 = arith.constant 0 : i32
    return %c0_i32, %c0_i32_0 : i32, i32
  }
  func.func @transform_1(%arg0: i32) -> (i32, i32) {
    %c0_i32 = arith.constant 0 : i32
    %c0_i32_0 = arith.constant 0 : i32
    %c0_i32_1 = arith.constant 0 : i32
    return %c0_i32, %c0_i32_0 : i32, i32
  }
  func.func @transform_2(%arg0: i32) -> (i32, i32) {
    %c0_i32 = arith.constant 0 : i32
    %c0_i32_0 = arith.constant 0 : i32
    %c0_i32_1 = arith.constant 0 : i32
    return %c0_i32, %c0_i32_0 : i32, i32
  }
  func.func @transform_3(%arg0: i32) -> (i32, i32) {
    %c0_i32 = arith.constant 0 : i32
    %c0_i32_0 = arith.constant 0 : i32
    %c0_i32_1 = arith.constant 0 : i32
    return %c0_i32, %c0_i32_0 : i32, i32
  }
}

</mosaic_0001>

<bundles_post_ra>
// kernel: tpu_custom_call.1
= control target key start
LH: loop header
LB: loop body
LE: loop exit
PB: predicated region body
PF: predicated region fallthrough
CT: control target
= control target key end

     0   :  { %8 = vsyncpa [#allocation3], 0  ;;  %s6726_s0 = inlined_call_operand.hbm [shape: f32[16,64], index: 0, kind: input, shape index: {}]   ;;  %s6727_s1 = inlined_call_operand.hbm [shape: f32[520,128], index: 1, kind: input, shape index: {}]   ;;  %s6728_s2 = inlined_call_operand.hbm [shape: f32[24,128], index: 2, kind: input, shape index: {}]   ;;  %s6729_s3 = inlined_call_operand.hbm [shape: f32[1,16], index: 3, kind: output, shape index: {}]  }
   0x1   :  { %9 = vsyncpa [#allocation6], 0 }
   0x2   :  { %10 = vsyncpa [#allocation4], 0  ;;  %s5844_s12 = smov [#allocation5]   ;;  %s5845_s14 = smov [#allocation2]  }
   0x3   :  { %s28_s13 = sshll.u32 %s5844_s12, 4  ;;  %s16_s15 = sshll.u32 %s5845_s14, 4  ;;  %s29_s13 = int_to_ptr.vmem [resolvable:$true] %s28_s13  ;;  %s17_s15 = int_to_ptr.vmem [resolvable:$true] %s16_s15 }
   0x4   :  { %s5766_s16 = scalar_lea.vmem %s29_s13, 8320  ;;  %p5771_p1 = scmp.lt.s32.totalorder %s29_s13, %s29_s13 }
   0x5   :  { %p5767_p0 = scmp.ne.s32.totalorder %s29_s13, %s5766_s16  ;;  %p5772_p2 = scmp.lt.s32.totalorder %s5766_s16, %s5766_s16 }
   0x7   :  { %p5773_p3 = por %p5772_p2, %p5771_p1 }
   0x9   :  { %p5774_p4 = pnand %p5773_p3, %p5767_p0 }
   0xb   :  { %5777 = shalt.err (!%p5774_p4)
}
   0xc   :  { %s5846_s17 = smov 128   ;;  %s5847_s18 = smov 8  }
   0xd   :  { %34 = dma.hbm_to_vmem [thread:$0]  %s6727_s1, 8320, %s29_s13, [#allocation6], %s5846_s17, %s5846_s17, %s5847_s18  }
   0xe   :  { %s5786_s21 = scalar_lea.vmem %s17_s15, 256  ;;  %p5791_p6 = scmp.lt.s32.totalorder %s17_s15, %s17_s15 }
   0xf   :  { %p5787_p5 = scmp.ne.s32.totalorder %s17_s15, %s5786_s21  ;;  %p5792_p7 = scmp.lt.s32.totalorder %s5786_s21, %s5786_s21 }
  0x11   :  { %p5793_p8 = por %p5792_p7, %p5791_p6 }
  0x13   :  { %p5794_p9 = pnand %p5793_p8, %p5787_p5 }
  0x15   :  { %5797 = shalt.err (!%p5794_p9)
}
  0x16   :  { %22 = dma.hbm_to_vmem [thread:$0]  %s6726_s0, 256, %s17_s15, [#allocation3], %s5846_s17, %s5846_s17, %s5847_s18  }
  0x17   :  { %s5848_s24 = smov [#allocation7]  }
  0x18   :  { %s40_s25 = sshll.u32 %s5848_s24, 4  ;;  %s41_s25 = int_to_ptr.vmem [resolvable:$true] %s40_s25 }
  0x19   :  { %s5806_s26 = scalar_lea.vmem %s41_s25, 384  ;;  %p5811_p11 = scmp.lt.s32.totalorder %s41_s25, %s41_s25 }
  0x1a   :  { %p5807_p10 = scmp.ne.s32.totalorder %s41_s25, %s5806_s26  ;;  %p5812_p12 = scmp.lt.s32.totalorder %s5806_s26, %s5806_s26 }
  0x1c   :  { %p5813_p13 = por %p5812_p12, %p5811_p11 }
  0x1e   :  { %p5814_p0 = pnand %p5813_p13, %p5807_p10 }
  0x20   :  { %5817 = shalt.err (!%p5814_p0)
}
  0x21   :  { %46 = dma.hbm_to_vmem [thread:$0]  %s6728_s2, 384, %s41_s25, [#allocation6], %s5846_s17, %s5846_s17, %s5847_s18  }
  0x22   :  { %5838 = dma.done.wait [#allocation3], 256  }
  0x23   :  { %5839 = vsyncadd [#allocation3], 4294967040 }
  0x24   :  { %5840 = dma.done.wait [#allocation6], 8704  }
  0x25   :  { %5841 = vsyncadd [#allocation6], 4294958592  ;;  %v68_v0 = vld [vmem:[#allocation5 + $0x38] sm:$0xff]  ;;  %v67_v1 = vld [vmem:[#allocation5 + $0x30] sm:$0xff]  ;;  %vm73_vm0 = vcmask 523264   ;;  %v69_v14 = vlaneseq  ;;  %vm232_vm1 = vcmask 261120  }
  0x26   :  { %5376 = vmatprep.subr.mxu1 %v68_v0  ;;  %v66_v2 = vld [vmem:[#allocation5 + $0x28] sm:$0xff]  ;;  %v59_v3 = vld [vmem:[#allocation2] sm:$0xff]  ;;  %v65_v4 = vld [vmem:[#allocation5 + $0x20] sm:$0xff]  ;;  %s5849_s0 = smov 104   ;;  %s5850_s2 = smov 120   ;;  %vm1198_vm2 = vcmask 64512  }
  0x27   :  { %5377 = vmatpush3.msra.mxu1 %v68_v0  ;;  %5392 = vmatprep.mubr.msk.f32.mxu1 %vm73_vm0, %v59_v3  ;;  %v64_v5 = vld [vmem:[#allocation5 + $0x18] sm:$0xff]  ;;  %v63_v6 = vld [vmem:[#allocation5 + $0x10] sm:$0xff]  ;;  %v62_v7 = vld [vmem:[#allocation5 + $0x8] sm:$0xff]  ;;  %v5898_v15 = vshrl.u32 %v69_v14, 7  ;;  %s5851_s28 = smov 112   ;;  %s5852_s29 = smov 96  }
  0x28   :  { %5378 = vmatprep.subr.mxu1 %v67_v1  ;;  %v61_v8 = vld [vmem:[#allocation5] sm:$0xff]  ;;  %v60_v9 = vld [vmem:[#allocation2 + $0x8] sm:$0xff]  ;;  %v202_v11 = vld [vmem:[#allocation5 + $0x50] sm:$0xff]  ;;  %v5853_v31 = vmov 1983009808   ;;  %s5855_s30 = smov 64  }
  0x29   :  { %5379 = vmatpush3.msra.mxu1 %v67_v1  ;;  %v203_v10 = vld [vmem:[#allocation5 + $0x58] sm:$0xff]  ;;  %v201_v12 = vld [vmem:[#allocation5 + $0x48] sm:$0xff]  ;;  %v200_v13 = vld [vmem:[#allocation5 + $0x40] sm:$0xff]  ;;  %v5901_v16 = vsub.s32 0, %v5898_v15  ;;  %v230_v23 = vsub.s32 2, %v5898_v15  ;;  %v337_v32 = vunpack.c.l.s4 %v5853_v31  ;;  %vm1563_vm5 = vcmask 130048  }
  0x2a   :  { %5380 = vmatprep.subr.mxu1 %v66_v2  ;;  %v56_v17 = vld [vmem:[#allocation7] sm:$0xff]  ;;  %v5854_v36 = vmov 1934713408   ;;  %s5857_s4 = smov 16   ;;  %s5858_s5 = smov 24   ;;  %vm2276_vm6 = vcmask 195584  }
  0x2b   :  { %5381 = vmatpush3.msra.mxu1 %v66_v2  ;;  %v72_v18 = vrot.slane %v56_v17, %v5901_v16  ;;  %v231_v24 = vrot.slane %v56_v17, %v230_v23  ;;  %v338_v35 = vunpack.c.0.s8 %v337_v32  ;;  %v369_v37 = vunpack.c.l.s4 %v5854_v36  ;;  %s5862_s6 = smov [#allocation8]  }
  0x2c   :  { %5382 = vmatprep.subr.mxu1 %v65_v4  ;;  %vm5860_vm7 = vmmov 0   ;;  %s5120_s7 = sshll.u32 %s5862_s6, 4  ;;  %vm5112_vm9 = vcmask 122880   ;;  %s5121_s7 = int_to_ptr.vmem [resolvable:$true] %s5120_s7 }
  0x2d   :  { %5383 = vmatpush3.msra.mxu1 %v65_v4  ;;  %v5954_v40 = vsub.s32 %v338_v35, %v5898_v15  ;;  %v370_v41 = vunpack.c.0.s8 %v369_v37  ;;  %s5818_s8 = scalar_lea.vmem %s5121_s7, 16  ;;  %s5822_s9 = scalar_lea.vmem %s5121_s7, 32 }
  0x2e   :  { %5384 = vmatprep.subr.mxu1 %v64_v5  ;;  %p5819_p1 = scmp.ne.s32.totalorder %s5121_s7, %s5818_s8  ;;  %p5823_p2 = scmp.lt.s32.totalorder %s5121_s7, %s5121_s7 }
  0x2f   :  { %5385 = vmatpush3.msra.mxu1 %v64_v5  ;;  %v5973_v50 = vsub.s32 %v370_v41, %v5898_v15  ;;  %p5824_p3 = scmp.lt.s32.totalorder %s5822_s9, %s5818_s8 }
  0x30   :  { %5386 = vmatprep.subr.mxu1 %v63_v6 }
  0x31   :  { %5387 = vmatpush3.msra.mxu1 %v63_v6  ;;  %p5825_p4 = por %p5824_p3, %p5823_p2 }
  0x32   :  { %5388 = vmatprep.subr.mxu1 %v62_v7 }
  0x33   :  { %5389 = vmatpush3.msra.mxu1 %v62_v7  ;;  %p5826_p5 = pnand %p5825_p4, %p5819_p1 }
  0x34   :  { %5390 = vmatprep.subr.mxu1 %v61_v8 }
  0x35   :  { %5391 = vmatpush3.msra.mxu1 %v61_v8 }
  0x36   :  { %5393 = vmatmul.mubr.msk.f32.vlgmr.msra.gmra.mxu1 %vm73_vm0, %v60_v9  ;;  %5395 = vmatprep.subr.mxu1 %v203_v10 }
  0x37   :  { %5396 = vmatpush3.msra.mxu1 %v203_v10 }
  0x38   :  { %5397 = vmatprep.subr.mxu1 %v202_v11 }
  0x39   :  { %5398 = vmatpush3.msra.mxu1 %v202_v11 }
  0x3a   :  { %5399 = vmatprep.subr.mxu1 %v201_v12 }
  0x3b   :  { %5400 = vmatpush3.msra.mxu1 %v201_v12 }
  0x3c   :  { %5401 = vmatprep.subr.mxu1 %v200_v13 }
  0x3d   :  { %5402 = vmatpush3.msra.mxu1 %v200_v13 }
  0xf6   :  { %v5394_v19 = vpop.f32.mrf.mxu1 }
  0xf7   :  { %v5906_v22 = vadd.f32 %v5394_v19, %v72_v18 }
  0xf8   :  { %v146_v20 = vpop.f32.mrf.mxu1 }
  0xf9   :  { %v5904_v21 = vadd.f32 %v146_v20, %v72_v18 }
  0xfb   :  { %5403 = vmatprep.mubr.msk.f32.mxu1 %vm232_vm1, %v5904_v21 }
  0xfc   :  { %5404 = vmatmul.mubr.msk.f32.vlgmr.msra.gmra.mxu1 %vm232_vm1, %v5906_v22 }
 0x1bc   :  { %v5405_v25 = vpop.f32.mrf.mxu1 }
 0x1bd   :  { %v5915_v26 = vadd.f32 %v5405_v25, %v231_v24 }
 0x1be   :  { %v305_v27 = vpop.f32.mrf.mxu1 }
 0x1bf   :  { %330 = vrot.lane.b32.xlu1 %v5915_v26, %s5849_s0  ;;  %318 = vrot.lane.b32.xlu0 %v5915_v26, %s5850_s2  ;;  %v5921_v28 = vadd.f32 %v305_v27, %v231_v24 }
 0x1c3   :  { %324 = vrot.lane.b32.xlu0 %v5915_v26, %s5851_s28  ;;  %316 = vrot.lane.b32.xlu1 %v5921_v28, %s5850_s2 }
 0x1c7   :  { %322 = vrot.lane.b32.xlu0 %v5921_v28, %s5851_s28  ;;  %328 = vrot.lane.b32.xlu1 %v5921_v28, %s5849_s0 }
 0x1cb   :  { %608 = vrot.lane.b32.xlu0 %v5915_v26, %s5852_s29 }
 0x1cf   :  { %606 = vrot.lane.b32.xlu0 %v5921_v28, %s5852_s29 }
 0x231   :  { %v5935_v29 = vpop.permute.xlu1 %330  ;;  %v5937_v30 = vpop.permute.xlu0 %318 }
 0x232   :  { %612 = vrot.lane.b32.xlu1 %v5937_v30, %s5852_s29  ;;  %v418_v20 = vcombine.low %v5937_v30, %v5935_v29  ;;  %v419_v25 = vcombine.high %v5937_v30, %v5935_v29 }
 0x234   :  { %v426_v35 = vrot.slane %v418_v20, %v5954_v40  ;;  %v433_v37 = vrot.slane %v419_v25, %v5954_v40 }
 0x235   :  { %v5941_v33 = vpop.permute.xlu0 %324  ;;  %v5943_v34 = vpop.permute.xlu1 %316 }
 0x236   :  { %616 = vrot.lane.b32.xlu0 %v5941_v33, %s5852_s29  ;;  %620 = vrot.lane.b32.xlu1 %v5935_v29, %s5852_s29  ;;  %v402_v19 = vcombine.low %v5915_v26, %v5941_v33  ;;  %v403_v24 = vcombine.high %v5915_v26, %v5941_v33 }
 0x238   :  { %v410_v27 = vrot.slane %v402_v19, %v5954_v40  ;;  %v417_v36 = vrot.slane %v403_v24, %v5954_v40 }
 0x239   :  { %v5949_v38 = vpop.permute.xlu0 %322  ;;  %v5951_v39 = vpop.permute.xlu1 %328 }
 0x23a   :  { %614 = vrot.lane.b32.xlu0 %v5949_v38, %s5852_s29  ;;  %v334_v42 = vcombine.low %v5921_v28, %v5949_v38  ;;  %v335_v43 = vcombine.high %v5921_v28, %v5949_v38  ;;  %v350_v44 = vcombine.low %v5943_v34, %v5951_v39  ;;  %v351_v45 = vcombine.high %v5943_v34, %v5951_v39 }
 0x23b   :  { %610 = vrot.lane.b32.xlu1 %v5943_v34, %s5852_s29  ;;  %v434_v41 = vcombine.low %v410_v27, %v426_v35 }
 0x23c   :  { %v342_v46 = vrot.slane %v334_v42, %v5954_v40  ;;  %v349_v47 = vrot.slane %v335_v43, %v5954_v40  ;;  %v358_v48 = vrot.slane %v350_v44, %v5954_v40  ;;  %v365_v49 = vrot.slane %v351_v45, %v5954_v40 }
 0x23d   :  { %v609_v18 = vpop.permute.xlu0 %608  ;;  %v435_v42 = vcombine.high %v410_v27, %v426_v35 }
 0x23e   :  { %908 = vrot.lane.b32.xlu0 %v5937_v30, %s5855_s30  ;;  %v366_v51 = vcombine.low %v342_v46, %v358_v48  ;;  %v367_v52 = vcombine.high %v342_v46, %v358_v48  ;;  %v382_v53 = vcombine.low %v349_v47, %v365_v49  ;;  %v383_v54 = vcombine.high %v349_v47, %v365_v49 }
 0x23f   :  { %618 = vrot.lane.b32.xlu1 %v5951_v39, %s5852_s29  ;;  %v450_v47 = vcombine.low %v417_v36, %v433_v37 }
 0x240   :  { %v374_v55 = vrot.slane %v366_v51, %v5973_v50  ;;  %v381_v56 = vrot.slane %v367_v52, %v5973_v50  ;;  %v390_v57 = vrot.slane %v382_v53, %v5973_v50  ;;  %v397_v58 = vrot.slane %v383_v54, %v5973_v50 }
 0x241   :  { %v607_v31 = vpop.permute.xlu0 %606  ;;  %v442_v52 = vrot.slane %v434_v41, %v5973_v50  ;;  %v449_v53 = vrot.slane %v435_v42, %v5973_v50 }
 0x242   :  { %v470_v59 = vcombine.low %v374_v55, %v381_v56  ;;  %v5134_v60 = vcombine.high %v374_v55, %v381_v56  ;;  %v486_v61 = vcombine.low %v390_v57, %v397_v58  ;;  %v5135_v62 = vcombine.high %v390_v57, %v397_v58 }
 0x243   :  { %904 = vrot.lane.b32.xlu1 %v5915_v26, %s5855_s30 }
 0x244   :  { %v477_v63 = vrot.slane %v470_v59, %v5954_v40  ;;  %v485_v0 = vrot.slane %v5134_v60, %v5954_v40  ;;  %v493_v1 = vrot.slane %v486_v61, %v5954_v40  ;;  %v501_v2 = vrot.slane %v5135_v62, %v5954_v40 }
 0x245   :  { %v458_v60 = vrot.slane %v450_v47, %v5973_v50 }
 0x246   :  { %v502_v3 = vcombine.low %v477_v63, %v485_v0  ;;  %v518_v4 = vcombine.low %v493_v1, %v501_v2  ;;  %v503_v5 = vcombine.high %v477_v63, %v485_v0  ;;  %v519_v6 = vcombine.high %v493_v1, %v501_v2 }
 0x247   :  { %912 = vrot.lane.b32.xlu1 %v5941_v33, %s5855_s30  ;;  %v538_v2 = vcombine.low %v442_v52, %v449_v53 }
 0x248   :  { %v510_v7 = vrot.slane %v502_v3, %v5973_v50  ;;  %v526_v8 = vrot.slane %v518_v4, %v5973_v50  ;;  %v5994_v9 = vrot.slane %v503_v5, %v5973_v50  ;;  %v5997_v10 = vrot.slane %v519_v6, %v5973_v50 }
 0x24a   :  { %v534_v11 = vcombine.low %v510_v7, %v526_v8  ;;  %v535_v12 = vcombine.high %v510_v7, %v526_v8  ;;  %v536_v13 = vcombine.low %v5994_v9, %v5997_v10  ;;  %v537_v17 = vcombine.high %v5994_v9, %v5997_v10 }
 0x24b   :  { %916 = vrot.lane.b32.xlu1 %v5935_v29, %s5855_s30  ;;  %v451_v29 = vcombine.high %v417_v36, %v433_v37 }
 0x24c   :  { %5410 = vmatprep.mubr.msk.f32.mxu1 %vm1198_vm2, %v534_v11  ;;  %5417 = vmatprep.mubr.msk.f32.mxu0 %vm1198_vm2, %v535_v12  ;;  %v5136_v12 = vcombine.high %v442_v52, %v449_v53 }
 0x24d   :  { %v465_v61 = vrot.slane %v451_v29, %v5973_v50 }
 0x24f   :  { %v5137_v41 = vcombine.high %v458_v60, %v465_v61 }
 0x2a4   :  { %v613_v32 = vpop.permute.xlu1 %612 }
 0x2a8   :  { %v617_v43 = vpop.permute.xlu0 %616  ;;  %v621_v44 = vpop.permute.xlu1 %620 }
 0x2a9   :  { %v698_v45 = vcombine.low %v609_v18, %v617_v43  ;;  %v699_v46 = vcombine.high %v609_v18, %v617_v43  ;;  %v714_v26 = vcombine.low %v613_v32, %v621_v44  ;;  %v715_v33 = vcombine.high %v613_v32, %v621_v44 }
 0x2aa   :  { %v554_v18 = vcombine.low %v458_v60, %v465_v61 }
 0x2ab   :  { %v706_v30 = vrot.slane %v698_v45, %v5954_v40  ;;  %v713_v48 = vrot.slane %v699_v46, %v5954_v40  ;;  %v722_v49 = vrot.slane %v714_v26, %v5954_v40  ;;  %v729_v51 = vrot.slane %v715_v33, %v5954_v40 }
 0x2ac   :  { %v615_v58 = vpop.permute.xlu0 %614  ;;  %v6040_v45 = vrot.slane %v538_v2, %v5954_v40 }
 0x2ad   :  { %v730_v54 = vcombine.low %v706_v30, %v722_v49  ;;  %v731_v55 = vcombine.high %v706_v30, %v722_v49  ;;  %v746_v56 = vcombine.low %v713_v48, %v729_v51  ;;  %v747_v57 = vcombine.high %v713_v48, %v729_v51  ;;  %v611_v59 = vpop.permute.xlu1 %610 }
 0x2ae   :  { %v630_v3 = vcombine.low %v607_v31, %v615_v58  ;;  %v631_v4 = vcombine.high %v607_v31, %v615_v58  ;;  %v6045_v48 = vrot.slane %v5136_v12, %v5954_v40  ;;  %v6048_v49 = vrot.slane %v554_v18, %v5954_v40 }
 0x2af   :  { %v738_v62 = vrot.slane %v730_v54, %v5973_v50  ;;  %v745_v63 = vrot.slane %v731_v55, %v5973_v50  ;;  %v754_v0 = vrot.slane %v746_v56, %v5973_v50  ;;  %v761_v1 = vrot.slane %v747_v57, %v5973_v50 }
 0x2b0   :  { %v638_v35 = vrot.slane %v630_v3, %v5954_v40  ;;  %v645_v31 = vrot.slane %v631_v4, %v5954_v40 }
 0x2b1   :  { %v834_v5 = vcombine.low %v738_v62, %v745_v63  ;;  %v5140_v6 = vcombine.high %v738_v62, %v745_v63  ;;  %v850_v7 = vcombine.low %v754_v0, %v761_v1  ;;  %v5141_v8 = vcombine.high %v754_v0, %v761_v1  ;;  %v619_v11 = vpop.permute.xlu1 %618 }
 0x2b2   :  { %v646_v19 = vcombine.low %v611_v59, %v619_v11  ;;  %v647_v20 = vcombine.high %v611_v59, %v619_v11  ;;  %v6055_v59 = vrot.slane %v5137_v41, %v5954_v40  ;;  %v570_v11 = vcombine.low %v6040_v45, %v6045_v48 }
 0x2b3   :  { %v841_v24 = vrot.slane %v834_v5, %v5954_v40  ;;  %v849_v25 = vrot.slane %v5140_v6, %v5954_v40  ;;  %v857_v27 = vrot.slane %v850_v7, %v5954_v40  ;;  %v865_v32 = vrot.slane %v5141_v8, %v5954_v40  ;;  %v909_v7 = vpop.permute.xlu0 %908 }
 0x2b4   :  { %v654_v36 = vrot.slane %v646_v19, %v5954_v40  ;;  %v661_v37 = vrot.slane %v647_v20, %v5954_v40  ;;  %v586_v12 = vcombine.low %v6048_v49, %v6055_v59 }
 0x2b5   :  { %v905_v42 = vpop.permute.xlu1 %904  ;;  %v866_v43 = vcombine.low %v841_v24, %v849_v25  ;;  %v882_v44 = vcombine.low %v857_v27, %v865_v32  ;;  %v867_v58 = vcombine.high %v841_v24, %v849_v25  ;;  %v883_v2 = vcombine.high %v857_v27, %v865_v32 }
 0x2b6   :  { %v662_v46 = vcombine.low %v638_v35, %v654_v36  ;;  %v663_v26 = vcombine.high %v638_v35, %v654_v36  ;;  %v678_v33 = vcombine.low %v645_v31, %v661_v37  ;;  %v679_v47 = vcombine.high %v645_v31, %v661_v37 }
 0x2b7   :  { %v874_v29 = vrot.slane %v866_v43, %v5973_v50  ;;  %v890_v30 = vrot.slane %v882_v44, %v5973_v50  ;;  %v881_v32 = vrot.slane %v867_v58, %v5973_v50  ;;  %v897_v35 = vrot.slane %v883_v2, %v5973_v50 }
 0x2b8   :  { %v670_v51 = vrot.slane %v662_v46, %v5973_v50  ;;  %v677_v52 = vrot.slane %v663_v26, %v5973_v50  ;;  %v686_v53 = vrot.slane %v678_v33, %v5973_v50  ;;  %v693_v54 = vrot.slane %v679_v47, %v5973_v50 }
 0x2b9   :  { %v913_v55 = vpop.permute.xlu1 %912  ;;  %v898_v56 = vcombine.low %v874_v29, %v890_v30  ;;  %v899_v57 = vcombine.high %v874_v29, %v890_v30  ;;  %v571_v46 = vcombine.high %v6040_v45, %v6045_v48  ;;  %v901_v45 = vcombine.high %v881_v32, %v897_v35 }
 0x2ba   :  { %v766_v60 = vcombine.low %v670_v51, %v677_v52  ;;  %v5138_v61 = vcombine.high %v670_v51, %v677_v52  ;;  %v782_v62 = vcombine.low %v686_v53, %v693_v54  ;;  %v5139_v63 = vcombine.high %v686_v53, %v693_v54 }
 0x2bb   :  { %v994_v0 = vcombine.low %v905_v42, %v913_v55  ;;  %v995_v1 = vcombine.high %v905_v42, %v913_v55  ;;  %5406 = vmatprep.subr.msk.mxu1 %vm1198_vm2, %v898_v56  ;;  %5413 = vmatprep.subr.msk.mxu0 %vm1198_vm2, %v899_v57  ;;  %v578_v42 = vrot.slane %v570_v11, %v5973_v50 }
 0x2bc   :  { %v773_v3 = vrot.slane %v766_v60, %v5954_v40  ;;  %v781_v4 = vrot.slane %v5138_v61, %v5954_v40  ;;  %v789_v5 = vrot.slane %v782_v62, %v5954_v40  ;;  %v797_v6 = vrot.slane %v5139_v63, %v5954_v40  ;;  %5407 = vmatpush3.xpose.msk.msra.mxu1 %vm1198_vm2, %v898_v56 }
 0x2bd   :  { %5414 = vmatpush3.xpose.msk.msra.mxu0 %vm1198_vm2, %v899_v57  ;;  %v917_v8 = vpop.permute.xlu1 %916  ;;  %v1002_v25 = vrot.slane %v994_v0, %v5954_v40  ;;  %v1009_v27 = vrot.slane %v995_v1, %v5954_v40  ;;  %v900_v52 = vcombine.low %v881_v32, %v897_v35  ;;  %v594_v53 = vrot.slane %v586_v12, %v5973_v50 }
 0x2be   :  { %v1010_v18 = vcombine.low %v909_v7, %v917_v8  ;;  %v1011_v19 = vcombine.high %v909_v7, %v917_v8  ;;  %v798_v20 = vcombine.low %v773_v3, %v781_v4  ;;  %v814_v24 = vcombine.low %v789_v5, %v797_v6 }
 0x2bf   :  { %v799_v43 = vcombine.high %v773_v3, %v781_v4  ;;  %v815_v44 = vcombine.high %v789_v5, %v797_v6  ;;  %v602_v0 = vcombine.low %v578_v42, %v594_v53  ;;  %v603_v1 = vcombine.high %v578_v42, %v594_v53 }
 0x2c0   :  { %v1018_v31 = vrot.slane %v1010_v18, %v5954_v40  ;;  %v1025_v36 = vrot.slane %v1011_v19, %v5954_v40  ;;  %v806_v37 = vrot.slane %v798_v20, %v5973_v50  ;;  %v822_v41 = vrot.slane %v814_v24, %v5973_v50 }
 0x2c1   :  { %v813_v48 = vrot.slane %v799_v43, %v5973_v50  ;;  %v829_v58 = vrot.slane %v815_v44, %v5973_v50  ;;  %v587_v2 = vcombine.high %v6048_v49, %v6055_v59  ;;  %v585_v8 = vrot.slane %v571_v46, %v5973_v50 }
 0x2c2   :  { %v1026_v26 = vcombine.low %v1002_v25, %v1018_v31  ;;  %v1027_v33 = vcombine.high %v1002_v25, %v1018_v31  ;;  %v1042_v47 = vcombine.low %v1009_v27, %v1025_v36  ;;  %v1043_v29 = vcombine.high %v1009_v27, %v1025_v36 }
 0x2c3   :  { %v830_v30 = vcombine.low %v806_v37, %v822_v41  ;;  %v831_v51 = vcombine.high %v806_v37, %v822_v41  ;;  %v832_v7 = vcombine.low %v813_v48, %v829_v58  ;;  %v833_v12 = vcombine.high %v813_v48, %v829_v58 }
 0x2c4   :  { %v1034_v54 = vrot.slane %v1026_v26, %v5973_v50  ;;  %v1041_v55 = vrot.slane %v1027_v33, %v5973_v50  ;;  %v1050_v56 = vrot.slane %v1042_v47, %v5973_v50  ;;  %v1057_v57 = vrot.slane %v1043_v29, %v5973_v50 }
 0x2c5   :  { %5408 = vmatprep.subr.msk.mxu1 %vm1198_vm2, %v830_v30  ;;  %5415 = vmatprep.subr.msk.mxu0 %vm1198_vm2, %v831_v51  ;;  %v601_v18 = vrot.slane %v587_v2, %v5973_v50  ;;  %v157_v31 = vadd.s32 8, %v5898_v15  ;;  %v183_v36 = vand.u32 127, %v69_v14  ;;  %v162_v42 = vand.u32 1, %v5898_v15 }
 0x2c6   :  { %v1130_v60 = vcombine.low %v1034_v54, %v1041_v55  ;;  %v5144_v61 = vcombine.high %v1034_v54, %v1041_v55  ;;  %v1146_v62 = vcombine.low %v1050_v56, %v1057_v57  ;;  %v5145_v63 = vcombine.high %v1050_v56, %v1057_v57  ;;  %5409 = vmatpush3.xpose.msk.msra.mxu1 %vm1198_vm2, %v830_v30 }
 0x2c7   :  { %5416 = vmatpush3.xpose.msk.msra.mxu0 %vm1198_vm2, %v831_v51  ;;  %5420 = vmatprep.subr.msk.mxu1 %vm1198_vm2, %v900_v52  ;;  %v604_v9 = vcombine.low %v585_v8, %v601_v18  ;;  %v605_v35 = vcombine.high %v585_v8, %v601_v18  ;;  %v169_v37 = vand.u32 1, %v157_v31  ;;  %v188_v41 = vand.u32 1, %v183_v36 }
 0x2c8   :  { %5427 = vmatprep.subr.msk.mxu0 %vm1198_vm2, %v901_v45  ;;  %v1137_v3 = vrot.slane %v1130_v60, %v5954_v40  ;;  %v1145_v4 = vrot.slane %v5144_v61, %v5954_v40  ;;  %v1153_v5 = vrot.slane %v1146_v62, %v5954_v40  ;;  %v1161_v6 = vrot.slane %v5145_v63, %v5954_v40 }
 0x2c9   :  { %5411 = vmatmul.mubr.msk.f32.vlgmr.msra.gmra.mxu1 %vm1198_vm2, %v602_v0  ;;  %vm197_vm3 = vcmp.eq.s32.totalorder %v169_v37, %v188_v41  ;;  %v5856_v44 = vmov -1e+09   ;;  %vm196_vm4 = vcmp.eq.s32.totalorder %v162_v42, %v188_v41 }
 0x2ca   :  { %5418 = vmatmul.mubr.msk.f32.vlgmr.msra.gmra.mxu0 %vm1198_vm2, %v603_v1  ;;  %5421 = vmatpush3.xpose.msk.msra.mxu1 %vm1198_vm2, %v900_v52  ;;  %v1162_v49 = vcombine.low %v1137_v3, %v1145_v4  ;;  %v1178_v59 = vcombine.low %v1153_v5, %v1161_v6  ;;  %v1163_v11 = vcombine.high %v1137_v3, %v1145_v4  ;;  %v6130_v46 = vsel %vm197_vm3, 0.0, %v5856_v44 }
 0x2cb   :  { %5424 = vmatprep.mubr.msk.f32.mxu1 %vm1198_vm2, %v536_v13  ;;  %5428 = vmatpush3.xpose.msk.msra.mxu0 %vm1198_vm2, %v901_v45  ;;  %v1179_v19 = vcombine.high %v1153_v5, %v1161_v6  ;;  %v6133_v52 = vsel %vm196_vm4, 0.0, %v5856_v44 }
 0x2cc   :  { %5431 = vmatprep.mubr.msk.f32.mxu0 %vm1198_vm2, %v537_v17  ;;  %5422 = vmatprep.subr.msk.mxu1 %vm1198_vm2, %v832_v7  ;;  %v1170_v20 = vrot.slane %v1162_v49, %v5973_v50  ;;  %v1186_v24 = vrot.slane %v1178_v59, %v5973_v50  ;;  %v1177_v25 = vrot.slane %v1163_v11, %v5973_v50 }
 0x2cd   :  { %5429 = vmatprep.subr.msk.mxu0 %vm1198_vm2, %v833_v12  ;;  %v1193_v13 = vrot.slane %v1179_v19, %v5973_v50 }
 0x2ce   :  { %5423 = vmatpush3.xpose.msk.msra.mxu1 %vm1198_vm2, %v832_v7  ;;  %v1194_v27 = vcombine.low %v1170_v20, %v1186_v24  ;;  %v1195_v32 = vcombine.high %v1170_v20, %v1186_v24 }
 0x2cf   :  { %5430 = vmatpush3.xpose.msk.msra.mxu0 %vm1198_vm2, %v833_v12  ;;  %v6121_v10 = vcombine.low %v1177_v25, %v1193_v13  ;;  %v6123_v17 = vcombine.high %v1177_v25, %v1193_v13 }
 0x2d0   :  { %5434 = vmatprep.subr.mxu0 %v1194_v27  ;;  %5441 = vmatprep.subr.mxu1 %v1195_v32 }
 0x2d1   :  { %5425 = vmatmul.mubr.msk.f32.vlgmr.msra.gmra.mxu1 %vm1198_vm2, %v604_v9 }
 0x2d2   :  { %5432 = vmatmul.mubr.msk.f32.vlgmr.msra.gmra.mxu0 %vm1198_vm2, %v605_v35  ;;  %5442 = vmatpush3.msra.mxu1 %v1195_v32 }
 0x2d3   :  { %5435 = vmatpush3.msra.mxu0 %v1194_v27 }
 0x389   :  { %v5412_v43 = vpop.f32.mrf.mxu1 }
 0x38a   :  { %v1548_v26 = vmul.f32 0.35355338, %v5412_v43  ;;  %v5419_v33 = vpop.f32.mrf.mxu0 }
 0x38b   :  { %v1550_v47 = vmul.f32 0.35355338, %v5419_v33  ;;  %v1277_v29 = vpop.f32.mrf.mxu1 }
 0x38c   :  { %v1364_v30 = vpop.f32.mrf.mxu0  ;;  %v1556_v51 = vadd.f32 %v1548_v26, %v6130_v46  ;;  %v1547_v14 = vmul.f32 0.35355338, %v1277_v29 }
 0x38d   :  { %v1549_v53 = vmul.f32 0.35355338, %v1364_v30  ;;  %v1558_v55 = vadd.f32 %v1550_v47, %v6130_v46 }
 0x38e   :  { %v1567_v54 = vsel %vm1563_vm5, %v1556_v51, -inf  ;;  %v1555_v48 = vadd.f32 %v1547_v14, %v6133_v52 }
 0x38f   :  { %1568 = vmax.xlane.f32.xlu0 %v1567_v54  ;;  %v1557_v56 = vadd.f32 %v1549_v53, %v6133_v52  ;;  %v1573_v61 = vsel %vm1563_vm5, %v1558_v55, -inf }
 0x390   :  { %v1564_v3 = vsel %vm1563_vm5, %v1555_v48, -inf }
 0x391   :  { %v1570_v57 = vsel %vm1563_vm5, %v1557_v56, -inf  ;;  %v5426_v45 = vpop.f32.mrf.mxu1 }
 0x392   :  { %1571 = vmax.xlane.f32.xlu1 %v1570_v57  ;;  %v1552_v58 = vmul.f32 0.35355338, %v5426_v45  ;;  %v5433_v60 = vpop.f32.mrf.mxu0 }
 0x393   :  { %v1554_v62 = vmul.f32 0.35355338, %v5433_v60  ;;  %1574 = vmax.xlane.f32.xlu0 %v1573_v61  ;;  %v1451_v63 = vpop.f32.mrf.mxu1 }
 0x394   :  { %v1538_v0 = vpop.f32.mrf.mxu0  ;;  %v1551_v1 = vmul.f32 0.35355338, %v1451_v63  ;;  %v1560_v2 = vadd.f32 %v1552_v58, %v6130_v46 }
 0x395   :  { %v1553_v4 = vmul.f32 0.35355338, %v1538_v0  ;;  %v1562_v6 = vadd.f32 %v1554_v62, %v6130_v46 }
 0x396   :  { %v1579_v5 = vsel %vm1563_vm5, %v1560_v2, -inf  ;;  %v1559_v7 = vadd.f32 %v1551_v1, %v6133_v52 }
 0x397   :  { %1565 = vmax.xlane.f32.xlu0 %v1564_v3  ;;  %1580 = vmax.xlane.f32.xlu1 %v1579_v5  ;;  %v1585_v8 = vsel %vm1563_vm5, %v1562_v6, -inf  ;;  %v1561_v59 = vadd.f32 %v1553_v4, %v6133_v52 }
 0x398   :  { %v1576_v49 = vsel %vm1563_vm5, %v1559_v7, -inf }
 0x399   :  { %v1582_v11 = vsel %vm1563_vm5, %v1561_v59, -inf }
 0x39b   :  { %1586 = vmax.xlane.f32.xlu0 %v1585_v8  ;;  %1577 = vmax.xlane.f32.xlu1 %v1576_v49 }
 0x39f   :  { %1583 = vmax.xlane.f32.xlu0 %v1582_v11 }
 0x3ac   :  { %906 = vrot.lane.b32.xlu1 %v5943_v34, %s5855_s30 }
 0x3b5   :  { %902 = vrot.lane.b32.xlu0 %v5921_v28, %s5855_s30 }
 0x418   :  { %v1569_v12 = vpop.xlane.xlu0 %1568 }
 0x419   :  { %v1589_v18 = vsub.f32 %v1556_v51, %v1569_v12 }
 0x41b   :  { %v1598_v19 = vmul.f32 1.442695, %v1589_v18  ;;  %v1572_v20 = vpop.xlane.xlu1 %1571 }
 0x41c   :  { %v1590_v24 = vsub.f32 %v1557_v56, %v1572_v20  ;;  %v1575_v25 = vpop.xlane.xlu0 %1574 }
 0x41d   :  { %5671 = vpow2.f32 %v1598_v19  ;;  %v1591_v13 = vsub.f32 %v1558_v55, %v1575_v25 }
 0x41e   :  { %v1600_v27 = vmul.f32 1.442695, %v1590_v24 }
 0x41f   :  { %v1602_v32 = vmul.f32 1.442695, %v1591_v13 }
 0x420   :  { %v1566_v9 = vpop.xlane.xlu0 %1565  ;;  %v1581_v35 = vpop.xlane.xlu1 %1580 }
 0x421   :  { %5673 = vpow2.f32 %v1602_v32  ;;  %v1588_v31 = vsub.f32 %v1555_v48, %v1566_v9  ;;  %v1593_v36 = vsub.f32 %v1560_v2, %v1581_v35 }
 0x422   :  { %5675 = vpow2.f32 %v1600_v27 }
 0x423   :  { %v1596_v34 = vmul.f32 1.442695, %v1588_v31  ;;  %v1606_v37 = vmul.f32 1.442695, %v1593_v36 }
 0x424   :  { %v1587_v41 = vpop.xlane.xlu0 %1586  ;;  %v1578_v28 = vpop.xlane.xlu1 %1577 }
 0x425   :  { %5677 = vpow2.f32 %v1596_v34  ;;  %v1595_v42 = vsub.f32 %v1562_v6, %v1587_v41  ;;  %v1592_v43 = vsub.f32 %v1559_v7, %v1578_v28 }
 0x426   :  { %5679 = vpow2.f32 %v1606_v37 }
 0x427   :  { %v1610_v44 = vmul.f32 1.442695, %v1595_v42  ;;  %v1604_v26 = vmul.f32 1.442695, %v1592_v43 }
 0x428   :  { %v1584_v33 = vpop.xlane.xlu0 %1583  ;;  %v907_v1 = vpop.permute.xlu1 %906 }
 0x429   :  { %5681 = vpow2.f32 %v1610_v44  ;;  %v1594_v47 = vsub.f32 %v1561_v59, %v1584_v33 }
 0x42a   :  { %v6154_v29 = vpop.eup %5671  ;;  %5683 = vpow2.f32 %v1604_v26 }
 0x42b   :  { %v1608_v30 = vmul.f32 1.442695, %v1594_v47  ;;  %v1615_v51 = vsel %vm1563_vm5, %v6154_v29, 0.0 }
 0x42c   :  { %1616 = vadd.xlane.f32.xlu1 %v1615_v51  ;;  %v903_v2 = vpop.permute.xlu0 %902 }
 0x42d   :  { %5685 = vpow2.f32 %v1608_v30 }
 0x42e   :  { %v6158_v14 = vpop.eup %5673 }
 0x42f   :  { %v1621_v53 = vsel %vm1563_vm5, %v6158_v14, 0.0  ;;  %v5676_v54 = vpop.eup %5675 }
 0x430   :  { %1622 = vadd.xlane.f32.xlu0 %v1621_v53  ;;  %v1618_v57 = vsel %vm1563_vm5, %v5676_v54, 0.0 }
 0x432   :  { %v5678_v55 = vpop.eup %5677 }
 0x433   :  { %v1612_v56 = vsel %vm1563_vm5, %v5678_v55, 0.0  ;;  %v6164_v45 = vpop.eup %5679 }
 0x434   :  { %1613 = vadd.xlane.f32.xlu1 %v1612_v56  ;;  %1619 = vadd.xlane.f32.xlu0 %v1618_v57  ;;  %v1627_v60 = vsel %vm1563_vm5, %v6164_v45, 0.0 }
 0x436   :  { %v6166_v48 = vpop.eup %5681 }
 0x437   :  { %v1633_v58 = vsel %vm1563_vm5, %v6166_v48, 0.0  ;;  %v6172_v61 = vpop.eup %5683 }
 0x438   :  { %1634 = vadd.xlane.f32.xlu0 %v1633_v58  ;;  %1628 = vadd.xlane.f32.xlu1 %v1627_v60  ;;  %v1624_v0 = vsel %vm1563_vm5, %v6172_v61, 0.0 }
 0x43a   :  { %v6174_v62 = vpop.eup %5685 }
 0x43b   :  { %v1630_v63 = vsel %vm1563_vm5, %v6174_v62, 0.0 }
 0x43c   :  { %1631 = vadd.xlane.f32.xlu0 %v1630_v63  ;;  %1625 = vadd.xlane.f32.xlu1 %v1624_v0 }
 0x44d   :  { %914 = vrot.lane.b32.xlu1 %v5951_v39, %s5855_s30 }
 0x452   :  { %910 = vrot.lane.b32.xlu0 %v5949_v38, %s5855_s30 }
 0x4b5   :  { %v1617_v3 = vpop.xlane.xlu1 %1616 }
 0x4b9   :  { %v1623_v4 = vpop.xlane.xlu0 %1622 }
 0x4bd   :  { %v1620_v5 = vpop.xlane.xlu0 %1619  ;;  %v1614_v6 = vpop.xlane.xlu1 %1613 }
 0x4be   :  { %5687 = vrcp.f32 %v1620_v5 }
 0x4bf   :  { %5689 = vrcp.f32 %v1614_v6 }
 0x4c0   :  { %5691 = vrcp.f32 %v1617_v3 }
 0x4c1   :  { %v1635_v7 = vpop.xlane.xlu0 %1634  ;;  %v1629_v8 = vpop.xlane.xlu1 %1628  ;;  %5693 = vrcp.f32 %v1623_v4 }
 0x4c2   :  { %5695 = vrcp.f32 %v1635_v7 }
 0x4c5   :  { %v1632_v49 = vpop.xlane.xlu0 %1631  ;;  %v1626_v59 = vpop.xlane.xlu1 %1625 }
 0x4c6   :  { %5697 = vrcp.f32 %v1626_v59 }
 0x4c7   :  { %5699 = vrcp.f32 %v1632_v49 }
 0x4c8   :  { %5701 = vrcp.f32 %v1629_v8 }
 0x4c9   :  { %v911_v11 = vpop.permute.xlu0 %910  ;;  %v915_v12 = vpop.permute.xlu1 %914 }
 0x4ca   :  { %v926_v39 = vcombine.low %v903_v2, %v911_v11  ;;  %v927_v18 = vcombine.high %v903_v2, %v911_v11  ;;  %v942_v19 = vcombine.low %v907_v1, %v915_v12  ;;  %v943_v38 = vcombine.high %v907_v1, %v915_v12 }
 0x4cb   :  { %v5688_v20 = vpop.eup %5687 }
 0x4cc   :  { %v5690_v24 = vpop.eup %5689  ;;  %v934_v25 = vrot.slane %v926_v39, %v5954_v40  ;;  %v941_v13 = vrot.slane %v927_v18, %v5954_v40  ;;  %v950_v27 = vrot.slane %v942_v19, %v5954_v40  ;;  %v957_v32 = vrot.slane %v943_v38, %v5954_v40 }
 0x4cd   :  { %v1637_v9 = vmul.f32 %v5690_v24, %v5678_v55  ;;  %v1641_v35 = vmul.f32 %v5688_v20, %v5676_v54  ;;  %v5692_v55 = vpop.eup %5691 }
 0x4ce   :  { %v958_v31 = vcombine.low %v934_v25, %v950_v27  ;;  %v959_v36 = vcombine.high %v934_v25, %v950_v27  ;;  %v974_v34 = vcombine.low %v941_v13, %v957_v32  ;;  %v975_v37 = vcombine.high %v941_v13, %v957_v32  ;;  %v5694_v56 = vpop.eup %5693 }
 0x4cf   :  { %5438 = vmatprep.mubr.msk.f32.mxu0 %vm1563_vm5, %v1637_v9  ;;  %5445 = vmatprep.mubr.msk.f32.mxu1 %vm1563_vm5, %v1641_v35  ;;  %v5696_v60 = vpop.eup %5695  ;;  %v1639_v6 = vmul.f32 %v5692_v55, %v6154_v29  ;;  %v1643_v8 = vmul.f32 %v5694_v56, %v6158_v14 }
 0x4d0   :  { %v966_v41 = vrot.slane %v958_v31, %v5973_v50  ;;  %v973_v28 = vrot.slane %v959_v36, %v5973_v50  ;;  %v982_v42 = vrot.slane %v974_v34, %v5973_v50  ;;  %v989_v43 = vrot.slane %v975_v37, %v5973_v50 }
 0x4d1   :  { %v1651_v18 = vmul.f32 %v5696_v60, %v6166_v48 }
 0x4d2   :  { %v1062_v44 = vcombine.low %v966_v41, %v973_v28  ;;  %v5142_v26 = vcombine.high %v966_v41, %v973_v28  ;;  %v1078_v33 = vcombine.low %v982_v42, %v989_v43  ;;  %v5143_v47 = vcombine.high %v982_v42, %v989_v43 }
 0x4d3   :  { %v5698_v3 = vpop.eup %5697 }
 0x4d4   :  { %v1069_v30 = vrot.slane %v1062_v44, %v5954_v40  ;;  %v1077_v51 = vrot.slane %v5142_v26, %v5954_v40  ;;  %v1085_v53 = vrot.slane %v1078_v33, %v5954_v40  ;;  %v1093_v54 = vrot.slane %v5143_v47, %v5954_v40  ;;  %v5700_v7 = vpop.eup %5699 }
 0x4d5   :  { %v5702_v11 = vpop.eup %5701  ;;  %v1645_v12 = vmul.f32 %v5698_v3, %v6172_v61  ;;  %v1649_v29 = vmul.f32 %v5700_v7, %v6174_v62  ;;  %v207_v7 = vld [vmem:[#allocation5 + $0x78] sm:$0xff] }
 0x4d6   :  { %v1094_v57 = vcombine.low %v1069_v30, %v1077_v51  ;;  %v1110_v58 = vcombine.low %v1085_v53, %v1093_v54  ;;  %v1095_v1 = vcombine.high %v1069_v30, %v1077_v51  ;;  %v1111_v2 = vcombine.high %v1085_v53, %v1093_v54 }
 0x4d7   :  { %v1647_v61 = vmul.f32 %v5702_v11, %v6164_v45 }
 0x4d8   :  { %v1102_v63 = vrot.slane %v1094_v57, %v5973_v50  ;;  %v1118_v0 = vrot.slane %v1110_v58, %v5973_v50  ;;  %v1109_v49 = vrot.slane %v1095_v1, %v5973_v50  ;;  %v1125_v59 = vrot.slane %v1111_v2, %v5973_v50 }
 0x4da   :  { %v1126_v4 = vcombine.low %v1102_v63, %v1118_v0  ;;  %v1127_v5 = vcombine.high %v1102_v63, %v1118_v0  ;;  %v1128_v14 = vcombine.low %v1109_v49, %v1125_v59  ;;  %v1129_v39 = vcombine.high %v1109_v49, %v1125_v59 }
 0x4dc   :  { %5436 = vmatprep.subr.mxu0 %v1126_v4  ;;  %5443 = vmatprep.subr.mxu1 %v1127_v5 }
 0x4dd   :  { %5437 = vmatpush3.msra.mxu0 %v1126_v4  ;;  %5444 = vmatpush3.msra.mxu1 %v1127_v5 }
 0x4de   :  { %5439 = vmatmul.mubr.msk.f32.vlgmr.msra.gmra.mxu0 %vm1563_vm5, %v1639_v6  ;;  %5446 = vmatmul.mubr.msk.f32.vlgmr.msra.gmra.mxu1 %vm1563_vm5, %v1643_v8 }
 0x4df   :  { %5448 = vmatprep.subr.mxu0 %v6121_v10  ;;  %5455 = vmatprep.subr.mxu1 %v6123_v17 }
 0x4e0   :  { %5449 = vmatpush3.msra.mxu0 %v6121_v10  ;;  %5452 = vmatprep.mubr.msk.f32.mxu0 %vm1563_vm5, %v1645_v12 }
 0x4e1   :  { %5456 = vmatpush3.msra.mxu1 %v6123_v17  ;;  %5459 = vmatprep.mubr.msk.f32.mxu1 %vm1563_vm5, %v1649_v29 }
 0x4e2   :  { %5450 = vmatprep.subr.mxu0 %v1128_v14  ;;  %5457 = vmatprep.subr.mxu1 %v1129_v39 }
 0x4e3   :  { %5451 = vmatpush3.msra.mxu0 %v1128_v14  ;;  %5458 = vmatpush3.msra.mxu1 %v1129_v39 }
 0x4e4   :  { %5453 = vmatmul.mubr.msk.f32.vlgmr.msra.gmra.mxu0 %vm1563_vm5, %v1647_v61  ;;  %5460 = vmatmul.mubr.msk.f32.vlgmr.msra.gmra.mxu1 %vm1563_vm5, %v1651_v18  ;;  %v206_v61 = vld [vmem:[#allocation5 + $0x70] sm:$0xff] }
 0x4e5   :  { %5462 = vmatprep.subr.mxu0 %v207_v7 }
 0x4e6   :  { %5463 = vmatpush3.msra.mxu0 %v207_v7 }
 0x4e7   :  { %5464 = vmatprep.subr.mxu0 %v206_v61 }
 0x4e8   :  { %5465 = vmatpush3.msra.mxu0 %v206_v61 }
 0x59e   :  { %v5440_v10 = vpop.f32.mrf.mxu0  ;;  %v5447_v62 = vpop.f32.mrf.mxu1 }
 0x5a0   :  { %v1724_v19 = vpop.f32.mrf.mxu0  ;;  %v1805_v38 = vpop.f32.mrf.mxu1 }
 0x5a4   :  { %v5454_v20 = vpop.f32.mrf.mxu0  ;;  %v5461_v17 = vpop.f32.mrf.mxu1 }
 0x5a5   :  { %v2044_v24 = vcombine.low %v5440_v10, %v5454_v20  ;;  %v2045_v25 = vcombine.high %v5440_v10, %v5454_v20  ;;  %v2060_v13 = vcombine.low %v5447_v62, %v5461_v17  ;;  %v2061_v27 = vcombine.high %v5447_v62, %v5461_v17 }
 0x5a6   :  { %v1886_v32 = vpop.f32.mrf.mxu0  ;;  %v1967_v45 = vpop.f32.mrf.mxu1 }
 0x5a7   :  { %v2052_v48 = vrot.slane %v2044_v24, %v5954_v40  ;;  %v2059_v9 = vrot.slane %v2045_v25, %v5954_v40  ;;  %v2068_v35 = vrot.slane %v2060_v13, %v5954_v40  ;;  %v2075_v31 = vrot.slane %v2061_v27, %v5954_v40  ;;  %v205_v25 = vld [vmem:[#allocation5 + $0x68] sm:$0xff] }
 0x5a8   :  { %v1976_v36 = vcombine.low %v1724_v19, %v1886_v32  ;;  %v1977_v34 = vcombine.high %v1724_v19, %v1886_v32  ;;  %v1992_v37 = vcombine.low %v1805_v38, %v1967_v45  ;;  %v1993_v41 = vcombine.high %v1805_v38, %v1967_v45  ;;  %5466 = vmatprep.subr.mxu0 %v205_v25 }
 0x5a9   :  { %v2076_v28 = vcombine.low %v2052_v48, %v2068_v35  ;;  %v2077_v42 = vcombine.high %v2052_v48, %v2068_v35  ;;  %v2092_v43 = vcombine.low %v2059_v9, %v2075_v31  ;;  %v2093_v44 = vcombine.high %v2059_v9, %v2075_v31  ;;  %5467 = vmatpush3.msra.mxu0 %v205_v25  ;;  %v204_v35 = vld [vmem:[#allocation5 + $0x60] sm:$0xff]  ;;  %v209_v25 = vld [vmem:[#allocation5 + $0x88] sm:$0xff] }
 0x5aa   :  { %v1984_v26 = vrot.slane %v1976_v36, %v5954_v40  ;;  %v1991_v33 = vrot.slane %v1977_v34, %v5954_v40  ;;  %v2000_v47 = vrot.slane %v1992_v37, %v5954_v40  ;;  %v2007_v30 = vrot.slane %v1993_v41, %v5954_v40  ;;  %5468 = vmatprep.subr.mxu0 %v204_v35 }
 0x5ab   :  { %v2084_v51 = vrot.slane %v2076_v28, %v5973_v50  ;;  %v2091_v53 = vrot.slane %v2077_v42, %v5973_v50  ;;  %v2100_v54 = vrot.slane %v2092_v43, %v5973_v50  ;;  %v2107_v55 = vrot.slane %v2093_v44, %v5973_v50  ;;  %5469 = vmatpush3.msra.mxu0 %v204_v35  ;;  %v222_v35 = vld [vmem:[#allocation5 + $0xf0] sm:$0xff] }
 0x5ac   :  { %v2008_v56 = vcombine.low %v1984_v26, %v2000_v47  ;;  %v2009_v57 = vcombine.high %v1984_v26, %v2000_v47  ;;  %v2024_v58 = vcombine.low %v1991_v33, %v2007_v30  ;;  %v2025_v60 = vcombine.high %v1991_v33, %v2007_v30 }
 0x5ad   :  { %v2180_v63 = vcombine.low %v2084_v51, %v2091_v53  ;;  %v5172_v0 = vcombine.high %v2084_v51, %v2091_v53  ;;  %v2196_v1 = vcombine.low %v2100_v54, %v2107_v55  ;;  %v5173_v2 = vcombine.high %v2100_v54, %v2107_v55 }
 0x5ae   :  { %v2016_v3 = vrot.slane %v2008_v56, %v5973_v50  ;;  %v2023_v4 = vrot.slane %v2009_v57, %v5973_v50  ;;  %v2032_v5 = vrot.slane %v2024_v58, %v5973_v50  ;;  %v2039_v6 = vrot.slane %v2025_v60, %v5973_v50 }
 0x5af   :  { %v2187_v8 = vrot.slane %v2180_v63, %v5954_v40  ;;  %v2195_v49 = vrot.slane %v5172_v0, %v5954_v40  ;;  %v2203_v59 = vrot.slane %v2196_v1, %v5954_v40  ;;  %v2211_v11 = vrot.slane %v5173_v2, %v5954_v40 }
 0x5b0   :  { %v2112_v12 = vcombine.low %v2016_v3, %v2023_v4  ;;  %v5170_v29 = vcombine.high %v2016_v3, %v2023_v4  ;;  %v2128_v14 = vcombine.low %v2032_v5, %v2039_v6  ;;  %v5171_v39 = vcombine.high %v2032_v5, %v2039_v6  ;;  %v6265_v5 = vld [vmem:[#allocation7] sm:$0xff] }
 0x5b1   :  { %v2212_v18 = vcombine.low %v2187_v8, %v2195_v49  ;;  %v2228_v10 = vcombine.low %v2203_v59, %v2211_v11  ;;  %v2213_v62 = vcombine.high %v2187_v8, %v2195_v49  ;;  %v2229_v19 = vcombine.high %v2203_v59, %v2211_v11 }
 0x5b2   :  { %v2119_v38 = vrot.slane %v2112_v12, %v5954_v40  ;;  %v2127_v20 = vrot.slane %v5170_v29, %v5954_v40  ;;  %v2135_v17 = vrot.slane %v2128_v14, %v5954_v40  ;;  %v2143_v24 = vrot.slane %v5171_v39, %v5954_v40 }
 0x5b3   :  { %v2220_v13 = vrot.slane %v2212_v18, %v5973_v50  ;;  %v2236_v27 = vrot.slane %v2228_v10, %v5973_v50  ;;  %v2227_v34 = vrot.slane %v2213_v62, %v5973_v50  ;;  %v2243_v37 = vrot.slane %v2229_v19, %v5973_v50 }
 0x5b4   :  { %v2144_v32 = vcombine.low %v2119_v38, %v2127_v20  ;;  %v2160_v45 = vcombine.low %v2135_v17, %v2143_v24  ;;  %v2145_v48 = vcombine.high %v2119_v38, %v2127_v20  ;;  %v2161_v9 = vcombine.high %v2135_v17, %v2143_v24  ;;  %v211_v17 = vld [vmem:[#allocation5 + $0x98] sm:$0xff]  ;;  %v210_v24 = vld [vmem:[#allocation5 + $0x90] sm:$0xff] }
 0x5b5   :  { %v2245_v31 = vcombine.high %v2220_v13, %v2236_v27  ;;  %v2244_v36 = vcombine.low %v2220_v13, %v2236_v27  ;;  %v2246_v33 = vcombine.low %v2227_v34, %v2243_v37  ;;  %v2247_v30 = vcombine.high %v2227_v34, %v2243_v37  ;;  %5473 = vmatprep.subr.mxu1 %v211_v17  ;;  %v208_v13 = vld [vmem:[#allocation5 + $0x80] sm:$0xff]  ;;  %v227_v27 = vld [vmem:[#allocation5 + $0x118] sm:$0xff]  ;;  %v218_v37 = vld [vmem:[#allocation5 + $0xd0] sm:$0xff] }
 0x5b6   :  { %v2152_v41 = vrot.slane %v2144_v32, %v5973_v50  ;;  %v2168_v28 = vrot.slane %v2160_v45, %v5973_v50  ;;  %v2159_v44 = vrot.slane %v2145_v48, %v5973_v50  ;;  %v2175_v26 = vrot.slane %v2161_v9, %v5973_v50  ;;  %5474 = vmatpush3.msra.mxu1 %v211_v17  ;;  %v226_v32 = vld [vmem:[#allocation5 + $0x110] sm:$0xff]  ;;  %v225_v45 = vld [vmem:[#allocation5 + $0x108] sm:$0xff]  ;;  %v224_v48 = vld [vmem:[#allocation5 + $0x100] sm:$0xff] }
 0x5b7   :  { %2252 = vrot.lane.b32.xlu1 %v2245_v31, %s5847_s18  ;;  %v2281_v4 = vsub.s32 3, %v5898_v15  ;;  %5475 = vmatprep.subr.mxu1 %v210_v24  ;;  %v223_v9 = vld [vmem:[#allocation5 + $0xf8] sm:$0xff]  ;;  %v221_v31 = vld [vmem:[#allocation5 + $0xe8] sm:$0xff] }
 0x5b8   :  { %v2177_v42 = vcombine.high %v2152_v41, %v2168_v28  ;;  %v2176_v43 = vcombine.low %v2152_v41, %v2168_v28  ;;  %v2178_v47 = vcombine.low %v2159_v44, %v2175_v26  ;;  %v2179_v51 = vcombine.high %v2159_v44, %v2175_v26  ;;  %5476 = vmatpush3.msra.mxu1 %v210_v24  ;;  %v219_v34 = vld [vmem:[#allocation5 + $0xd8] sm:$0xff]  ;;  %v217_v41 = vld [vmem:[#allocation5 + $0xc8] sm:$0xff]  ;;  %v216_v28 = vld [vmem:[#allocation5 + $0xc0] sm:$0xff] }
 0x5b9   :  { %v2282_v6 = vrot.slane %v6265_v5, %v2281_v4  ;;  %5477 = vmatprep.subr.mxu1 %v209_v25  ;;  %5484 = vmatprep.subr.mxu0 %v227_v27 }
 0x5ba   :  { %2250 = vrot.lane.b32.xlu0 %v2177_v42, %s5847_s18  ;;  %5478 = vmatpush3.msra.mxu1 %v209_v25 }
 0x5bb   :  { %2260 = vrot.lane.b32.xlu1 %v2246_v33, %s5857_s4  ;;  %5479 = vmatprep.subr.mxu1 %v208_v13 }
 0x5bc   :  { %5480 = vmatpush3.msra.mxu1 %v208_v13 }
 0x5be   :  { %2258 = vrot.lane.b32.xlu0 %v2178_v47, %s5857_s4 }
 0x5bf   :  { %2268 = vrot.lane.b32.xlu1 %v2247_v30, %s5858_s5  ;;  %v2395_v30 = vsub.s32 4, %v5898_v15 }
 0x5c2   :  { %2266 = vrot.lane.b32.xlu0 %v2179_v51, %s5858_s5  ;;  %v2401_v51 = vsub.s32 5, %v5898_v15 }
 0x629   :  { %v2253_v53 = vpop.permute.xlu1 %2252 }
 0x62a   :  { %v2273_v60 = vsel %vm1198_vm2, %v2244_v36, %v2253_v53  ;;  %v220_v36 = vld [vmem:[#allocation5 + $0xe0] sm:$0xff]  ;;  %v2396_v53 = vrot.slane %v6265_v5, %v2395_v30 }
 0x62c   :  { %v2251_v54 = vpop.permute.xlu0 %2250 }
 0x62d   :  { %v2261_v55 = vpop.permute.xlu1 %2260  ;;  %v2272_v57 = vsel %vm1198_vm2, %v2176_v43, %v2251_v54 }
 0x62e   :  { %v2275_v1 = vsel %vm1563_vm5, %v2273_v60, %v2261_v55 }
 0x630   :  { %v2259_v56 = vpop.permute.xlu0 %2258 }
 0x631   :  { %v2269_v58 = vpop.permute.xlu1 %2268  ;;  %v2274_v63 = vsel %vm1563_vm5, %v2272_v57, %v2259_v56  ;;  %v2402_v56 = vrot.slane %v6265_v5, %v2401_v51 }
 0x632   :  { %v2278_v3 = vsel %vm2276_vm6, %v2275_v1, %v2269_v58 }
 0x634   :  { %v2267_v0 = vpop.permute.xlu0 %2266 }
 0x635   :  { %v2277_v2 = vsel %vm2276_vm6, %v2274_v63, %v2267_v0 }
 0x636   :  { %5470 = vmatprep.mubr.msk.f32.mxu0 %vm232_vm1, %v2277_v2  ;;  %v215_v2 = vld [vmem:[#allocation5 + $0xb8] sm:$0xff] }
 0x637   :  { %5471 = vmatmul.mubr.msk.f32.vlgmr.msra.gmra.mxu0 %vm232_vm1, %v2278_v3  ;;  %v214_v3 = vld [vmem:[#allocation5 + $0xb0] sm:$0xff] }
 0x638   :  { %5485 = vmatpush3.msra.mxu0 %v227_v27 }
 0x639   :  { %5486 = vmatprep.subr.mxu0 %v226_v32 }
 0x63a   :  { %5487 = vmatpush3.msra.mxu0 %v226_v32 }
 0x63b   :  { %5488 = vmatprep.subr.mxu0 %v225_v45 }
 0x63c   :  { %5489 = vmatpush3.msra.mxu0 %v225_v45 }
 0x63d   :  { %5490 = vmatprep.subr.mxu0 %v224_v48 }
 0x63e   :  { %5491 = vmatpush3.msra.mxu0 %v224_v48 }
 0x63f   :  { %5492 = vmatprep.subr.mxu0 %v223_v9 }
 0x640   :  { %5493 = vmatpush3.msra.mxu0 %v223_v9 }
 0x641   :  { %5494 = vmatprep.subr.mxu0 %v222_v35 }
 0x642   :  { %5495 = vmatpush3.msra.mxu0 %v222_v35 }
 0x643   :  { %5496 = vmatprep.subr.mxu0 %v221_v31 }
 0x644   :  { %5497 = vmatpush3.msra.mxu0 %v221_v31 }
 0x645   :  { %5498 = vmatprep.subr.mxu0 %v220_v36 }
 0x646   :  { %5499 = vmatpush3.msra.mxu0 %v220_v36  ;;  %v2614_v36 = vld [vmem:[#allocation5 + $0x138] sm:$0xff] }
 0x647   :  { %5500 = vmatprep.subr.mxu0 %v219_v34  ;;  %5519 = vmatprep.subr.mxu1 %v2614_v36 }
 0x648   :  { %5501 = vmatpush3.msra.mxu0 %v219_v34  ;;  %v2613_v34 = vld [vmem:[#allocation5 + $0x130] sm:$0xff] }
 0x649   :  { %5502 = vmatprep.subr.mxu0 %v218_v37 }
 0x64a   :  { %5503 = vmatpush3.msra.mxu0 %v218_v37  ;;  %v2612_v37 = vld [vmem:[#allocation5 + $0x128] sm:$0xff] }
 0x64b   :  { %5504 = vmatprep.subr.mxu0 %v217_v41 }
 0x64c   :  { %5505 = vmatpush3.msra.mxu0 %v217_v41  ;;  %v2611_v41 = vld [vmem:[#allocation5 + $0x120] sm:$0xff] }
 0x64d   :  { %5506 = vmatprep.subr.mxu0 %v216_v28 }
 0x64e   :  { %5507 = vmatpush3.msra.mxu0 %v216_v28 }
 0x64f   :  { %5508 = vmatprep.subr.mxu0 %v215_v2 }
 0x650   :  { %5509 = vmatpush3.msra.mxu0 %v215_v2 }
 0x651   :  { %5510 = vmatprep.subr.mxu0 %v214_v3 }
 0x652   :  { %5511 = vmatpush3.msra.mxu0 %v214_v3 }
 0x6f7   :  { %v5472_v7 = vpop.f32.mrf.mxu0 }
 0x6f8   :  { %v2361_v8 = vadd.f32 %v5472_v7, %v2282_v6  ;;  %v212_v7 = vld [vmem:[#allocation5 + $0xa0] sm:$0xff] }
 0x6f9   :  { %v2355_v49 = vpop.f32.mrf.mxu0 }
 0x6fa   :  { %v2356_v59 = vadd.f32 %v2355_v49, %v2282_v6  ;;  %v2365_v11 = vadd.f32 %v2361_v8, %v5906_v22  ;;  %v213_v6 = vld [vmem:[#allocation5 + $0xa8] sm:$0xff]  ;;  %v2407_v8 = vsub.s32 1, %v5898_v15  ;;  %v6297_v49 = vld [vmem:[#allocation7 + $0x8] sm:$0xff] }
 0x6fb   :  { %5512 = vmatprep.subr.mxu0 %v213_v6  ;;  %v2642_v3 = vrot.slane %v6297_v49, %v230_v23 }
 0x6fc   :  { %v2369_v12 = vsel %vm232_vm1, %v2365_v11, 0.0  ;;  %v2364_v29 = vadd.f32 %v2356_v59, %v5904_v21  ;;  %5513 = vmatpush3.msra.mxu0 %v213_v6  ;;  %v2408_v59 = vrot.slane %v6297_v49, %v2407_v8 }
 0x6fd   :  { %2370 = vadd.xlane.f32.xlu1 %v2369_v12  ;;  %5514 = vmatprep.subr.mxu0 %v212_v7 }
 0x6fe   :  { %v2366_v14 = vsel %vm232_vm1, %v2364_v29, 0.0  ;;  %5515 = vmatpush3.msra.mxu0 %v212_v7 }
 0x6ff   :  { %2367 = vadd.xlane.f32.xlu0 %v2366_v14 }
 0x786   :  { %v2371_v39 = vpop.xlane.xlu1 %2370 }
 0x787   :  { %v2374_v61 = vmul.f32 0.03125, %v2371_v39 }
 0x788   :  { %v2368_v18 = vpop.xlane.xlu0 %2367 }
 0x789   :  { %v2373_v10 = vmul.f32 0.03125, %v2368_v18  ;;  %v6274_v62 = vsub.f32 %v2365_v11, %v2374_v61  ;;  %v2495_v18 = vrot.slane %v6297_v49, %v5901_v16 }
 0x78b   :  { %v6276_v19 = vsub.f32 %v2364_v29, %v2373_v10  ;;  %v2378_v21 = vmul.f32 %v6274_v62, %v6274_v62 }
 0x78d   :  { %v2377_v38 = vmul.f32 %v6276_v19, %v6276_v19  ;;  %v2382_v20 = vsel %vm232_vm1, %v2378_v21, 0.0 }
 0x78f   :  { %v2379_v22 = vsel %vm232_vm1, %v2377_v38, 0.0 }
 0x790   :  { %2380 = vadd.xlane.f32.xlu0 %v2379_v22 }
 0x794   :  { %2383 = vadd.xlane.f32.xlu0 %v2382_v20 }
 0x819   :  { %v2381_v42 = vpop.xlane.xlu0 %2380 }
 0x81a   :  { %v2385_v43 = vmul.f32 0.03125, %v2381_v42 }
 0x81c   :  { %v2387_v44 = vadd.f32 1e-05, %v2385_v43 }
 0x81d   :  { %v2384_v26 = vpop.xlane.xlu0 %2383 }
 0x81e   :  { %5703 = vrsqrt.f32 %v2387_v44  ;;  %v2386_v33 = vmul.f32 0.03125, %v2384_v26 }
 0x820   :  { %v2388_v47 = vadd.f32 1e-05, %v2386_v33 }
 0x822   :  { %5705 = vrsqrt.f32 %v2388_v47  ;;  %v2601_v47 = vsub.s32 6, %v5898_v15 }
 0x82b   :  { %v5704_v54 = vpop.eup %5703 }
 0x82c   :  { %v2391_v55 = vmul.f32 %v5704_v54, %v6276_v19  ;;  %v2602_v54 = vrot.slane %v6265_v5, %v2601_v47 }
 0x82e   :  { %v2397_v57 = vmul.f32 %v2396_v53, %v2391_v55  ;;  %v2607_v55 = vsub.s32 7, %v5898_v15 }
 0x82f   :  { %v5706_v58 = vpop.eup %5705 }
 0x830   :  { %v2392_v60 = vmul.f32 %v5706_v58, %v6274_v62  ;;  %v2403_v63 = vadd.f32 %v2402_v56, %v2397_v57 }
 0x832   :  { %v2398_v0 = vmul.f32 %v2396_v53, %v2392_v60  ;;  %5481 = vmatprep.mubr.msk.f32.mxu1 %vm232_vm1, %v2403_v63 }
 0x834   :  { %v2404_v1 = vadd.f32 %v2402_v56, %v2398_v0 }
 0x836   :  { %5482 = vmatmul.mubr.msk.f32.vlgmr.msra.gmra.mxu1 %vm232_vm1, %v2404_v1 }
 0x837   :  { %5520 = vmatpush3.msra.mxu1 %v2614_v36 }
 0x838   :  { %5521 = vmatprep.subr.mxu1 %v2613_v34 }
 0x839   :  { %5522 = vmatpush3.msra.mxu1 %v2613_v34 }
 0x83a   :  { %5523 = vmatprep.subr.mxu1 %v2612_v37 }
 0x83b   :  { %5524 = vmatpush3.msra.mxu1 %v2612_v37 }
 0x83c   :  { %5525 = vmatprep.subr.mxu1 %v2611_v41 }
 0x83d   :  { %5526 = vmatpush3.msra.mxu1 %v2611_v41 }
 0x8f6   :  { %v5483_v11 = vpop.f32.mrf.mxu1 }
 0x8f7   :  { %v2487_v12 = vadd.f32 %v5483_v11, %v2408_v59 }
 0x8f8   :  { %v2481_v29 = vpop.f32.mrf.mxu1 }
 0x8f9   :  { %v2482_v14 = vadd.f32 %v2481_v29, %v2408_v59  ;;  %v2491_v61 = vmax.f32 %v2487_v12, 0.0 }
 0x8fb   :  { %v2490_v39 = vmax.f32 %v2482_v14, 0.0 }
 0x8fd   :  { %5516 = vmatprep.mubr.f32.mxu0 %v2490_v39 }
 0x8fe   :  { %5517 = vmatmul.mubr.f32.vlgmr.msra.gmra.mxu0 %v2491_v61 }
 0x9be   :  { %v5518_v10 = vpop.f32.mrf.mxu0 }
 0x9bf   :  { %v2568_v62 = vadd.f32 %v5518_v10, %v2495_v18 }
 0x9c0   :  { %v2562_v19 = vpop.f32.mrf.mxu0 }
 0x9c1   :  { %v2563_v38 = vadd.f32 %v2562_v19, %v2495_v18  ;;  %v2572_v22 = vadd.f32 %v2568_v62, %v2404_v1 }
 0x9c3   :  { %v2576_v21 = vsel %vm232_vm1, %v2572_v22, 0.0  ;;  %v2571_v20 = vadd.f32 %v2563_v38, %v2403_v63  ;;  %v2608_v63 = vrot.slane %v6265_v5, %v2607_v55 }
 0x9c4   :  { %2577 = vadd.xlane.f32.xlu0 %v2576_v21 }
 0x9c5   :  { %v2573_v17 = vsel %vm232_vm1, %v2571_v20, 0.0 }
 0x9c6   :  { %2574 = vadd.xlane.f32.xlu1 %v2573_v17 }
 0xa4d   :  { %v2578_v24 = vpop.xlane.xlu0 %2577 }
 0xa4e   :  { %v2580_v25 = vmul.f32 0.03125, %v2578_v24 }
 0xa4f   :  { %v2575_v13 = vpop.xlane.xlu1 %2574 }
 0xa50   :  { %v2582_v27 = vsub.f32 %v2572_v22, %v2580_v25  ;;  %v2579_v32 = vmul.f32 0.03125, %v2575_v13 }
 0xa52   :  { %v2581_v45 = vsub.f32 %v2571_v20, %v2579_v32  ;;  %v2584_v48 = vmul.f32 %v2582_v27, %v2582_v27 }
 0xa54   :  { %v2588_v9 = vsel %vm232_vm1, %v2584_v48, 0.0  ;;  %v2583_v35 = vmul.f32 %v2581_v45, %v2581_v45 }
 0xa55   :  { %2589 = vadd.xlane.f32.xlu0 %v2588_v9 }
 0xa56   :  { %v2585_v31 = vsel %vm232_vm1, %v2583_v35, 0.0 }
 0xa57   :  { %2586 = vadd.xlane.f32.xlu1 %v2585_v31 }
 0xade   :  { %v2590_v28 = vpop.xlane.xlu0 %2589 }
 0xadf   :  { %v2592_v42 = vmul.f32 0.03125, %v2590_v28 }
 0xae0   :  { %v2587_v43 = vpop.xlane.xlu1 %2586 }
 0xae1   :  { %v2594_v44 = vadd.f32 1e-05, %v2592_v42  ;;  %v2591_v26 = vmul.f32 0.03125, %v2587_v43 }
 0xae3   :  { %5707 = vrsqrt.f32 %v2594_v44  ;;  %v2593_v33 = vadd.f32 1e-05, %v2591_v26 }
 0xae5   :  { %5709 = vrsqrt.f32 %v2593_v33 }
 0xaf0   :  { %v5708_v53 = vpop.eup %5707 }
 0xaf1   :  { %v2598_v56 = vmul.f32 %v5708_v53, %v2582_v27 }
 0xaf2   :  { %v5710_v57 = vpop.eup %5709 }
 0xaf3   :  { %v2597_v58 = vmul.f32 %v5710_v57, %v2581_v45  ;;  %v2604_v60 = vmul.f32 %v2602_v54, %v2598_v56 }
 0xaf5   :  { %v2603_v0 = vmul.f32 %v2602_v54, %v2597_v58  ;;  %v6318_v2 = vadd.f32 %v2608_v63, %v2604_v60 }
 0xaf7   :  { %v6316_v1 = vadd.f32 %v2608_v63, %v2603_v0 }
 0xaf9   :  { %5527 = vmatprep.mubr.msk.f32.mxu1 %vm232_vm1, %v6316_v1 }
 0xafa   :  { %5528 = vmatmul.mubr.msk.f32.vlgmr.msra.gmra.mxu1 %vm232_vm1, %v6318_v2 }
 0xbba   :  { %v5529_v6 = vpop.f32.mrf.mxu1 }
 0xbbb   :  { %v6327_v7 = vadd.f32 %v5529_v6, %v2642_v3 }
 0xbbc   :  { %v2715_v59 = vpop.f32.mrf.mxu1 }
 0xbbd   :  { %2734 = vrot.lane.b32.xlu0 %v6327_v7, %s5851_s28  ;;  %2728 = vrot.lane.b32.xlu1 %v6327_v7, %s5850_s2  ;;  %v6333_v5 = vadd.f32 %v2715_v59, %v2642_v3 }
 0xbc1   :  { %2740 = vrot.lane.b32.xlu1 %v6327_v7, %s5849_s0  ;;  %2732 = vrot.lane.b32.xlu0 %v6333_v5, %s5851_s28 }
 0xbc5   :  { %3018 = vrot.lane.b32.xlu0 %v6327_v7, %s5852_s29  ;;  %2726 = vrot.lane.b32.xlu1 %v6333_v5, %s5850_s2 }
 0xbc9   :  { %3016 = vrot.lane.b32.xlu0 %v6333_v5, %s5852_s29  ;;  %2738 = vrot.lane.b32.xlu1 %v6333_v5, %s5849_s0 }
 0xc2f   :  { %v6347_v23 = vpop.permute.xlu0 %2734  ;;  %v6349_v49 = vpop.permute.xlu1 %2728 }
 0xc30   :  { %3026 = vrot.lane.b32.xlu0 %v6347_v23, %s5852_s29  ;;  %3022 = vrot.lane.b32.xlu1 %v6349_v49, %s5852_s29  ;;  %v2812_v0 = vcombine.low %v6327_v7, %v6347_v23  ;;  %v2813_v59 = vcombine.high %v6327_v7, %v6347_v23 }
 0xc33   :  { %v6355_v11 = vpop.permute.xlu1 %2740  ;;  %v6357_v12 = vpop.permute.xlu0 %2732 }
 0xc34   :  { %3024 = vrot.lane.b32.xlu0 %v6357_v12, %s5852_s29  ;;  %3030 = vrot.lane.b32.xlu1 %v6355_v11, %s5852_s29  ;;  %v2744_v14 = vcombine.low %v6333_v5, %v6357_v12  ;;  %v2745_v39 = vcombine.high %v6333_v5, %v6357_v12  ;;  %v2828_v63 = vcombine.low %v6349_v49, %v6355_v11 }
 0xc35   :  { %v2829_v3 = vcombine.high %v6349_v49, %v6355_v11 }
 0xc36   :  { %v2752_v62 = vrot.slane %v2744_v14, %v5954_v40  ;;  %v2759_v19 = vrot.slane %v2745_v39, %v5954_v40  ;;  %v2836_v14 = vrot.slane %v2828_v63, %v5954_v40 }
 0xc37   :  { %v6363_v29 = vpop.permute.xlu1 %2726  ;;  %v3019_v60 = vpop.permute.xlu0 %3018 }
 0xc38   :  { %3020 = vrot.lane.b32.xlu1 %v6363_v29, %s5852_s29 }
 0xc3b   :  { %v6371_v61 = vpop.permute.xlu1 %2738  ;;  %v3017_v6 = vpop.permute.xlu0 %3016 }
 0xc3c   :  { %v2760_v18 = vcombine.low %v6363_v29, %v6371_v61  ;;  %v2761_v10 = vcombine.high %v6363_v29, %v6371_v61  ;;  %3028 = vrot.lane.b32.xlu1 %v6371_v61, %s5852_s29 }
 0xc3e   :  { %v2768_v38 = vrot.slane %v2760_v18, %v5954_v40  ;;  %v2775_v22 = vrot.slane %v2761_v10, %v5954_v40  ;;  %v2820_v18 = vrot.slane %v2812_v0, %v5954_v40  ;;  %v2843_v10 = vrot.slane %v2829_v3, %v5954_v40 }
 0xc40   :  { %v2776_v21 = vcombine.low %v2752_v62, %v2768_v38  ;;  %v2777_v20 = vcombine.high %v2752_v62, %v2768_v38  ;;  %v2792_v17 = vcombine.low %v2759_v19, %v2775_v22  ;;  %v2793_v24 = vcombine.high %v2759_v19, %v2775_v22 }
 0xc41   :  { %v2827_v19 = vrot.slane %v2813_v59, %v5954_v40  ;;  %v2844_v38 = vcombine.low %v2820_v18, %v2836_v14  ;;  %v2845_v22 = vcombine.high %v2820_v18, %v2836_v14 }
 0xc42   :  { %v2784_v25 = vrot.slane %v2776_v21, %v5973_v50  ;;  %v2791_v13 = vrot.slane %v2777_v20, %v5973_v50  ;;  %v2800_v27 = vrot.slane %v2792_v17, %v5973_v50  ;;  %v2807_v32 = vrot.slane %v2793_v24, %v5973_v50 }
 0xc43   :  { %v2860_v17 = vcombine.low %v2827_v19, %v2843_v10  ;;  %v2861_v24 = vcombine.high %v2827_v19, %v2843_v10 }
 0xc44   :  { %v2880_v45 = vcombine.low %v2784_v25, %v2791_v13  ;;  %v5180_v48 = vcombine.high %v2784_v25, %v2791_v13  ;;  %v2896_v9 = vcombine.low %v2800_v27, %v2807_v32  ;;  %v5181_v35 = vcombine.high %v2800_v27, %v2807_v32 }
 0xc45   :  { %v2852_v32 = vrot.slane %v2844_v38, %v5973_v50 }
 0xc46   :  { %v2887_v31 = vrot.slane %v2880_v45, %v5954_v40  ;;  %v2895_v36 = vrot.slane %v5180_v48, %v5954_v40  ;;  %v2903_v34 = vrot.slane %v2896_v9, %v5954_v40  ;;  %v2911_v37 = vrot.slane %v5181_v35, %v5954_v40 }
 0xc47   :  { %v2859_v45 = vrot.slane %v2845_v22, %v5973_v50 }
 0xc48   :  { %v2912_v41 = vcombine.low %v2887_v31, %v2895_v36  ;;  %v2928_v28 = vcombine.low %v2903_v34, %v2911_v37  ;;  %v2913_v42 = vcombine.high %v2887_v31, %v2895_v36  ;;  %v2929_v43 = vcombine.high %v2903_v34, %v2911_v37 }
 0xc49   :  { %v2868_v36 = vrot.slane %v2860_v17, %v5973_v50  ;;  %v2875_v34 = vrot.slane %v2861_v24, %v5973_v50 }
 0xc4a   :  { %v6392_v44 = vrot.slane %v2912_v41, %v5973_v50  ;;  %v6395_v26 = vrot.slane %v2928_v28, %v5973_v50  ;;  %v6398_v33 = vrot.slane %v2913_v42, %v5973_v50  ;;  %v6401_v53 = vrot.slane %v2929_v43, %v5973_v50 }
 0xc4b   :  { %v2964_v14 = vcombine.low %v2868_v36, %v2875_v34 }
 0xc4c   :  { %v2944_v54 = vcombine.low %v6392_v44, %v6395_v26  ;;  %v2947_v56 = vcombine.high %v6398_v33, %v6401_v53  ;;  %v2945_v57 = vcombine.high %v6392_v44, %v6395_v26  ;;  %v2946_v58 = vcombine.low %v6398_v33, %v6401_v53 }
 0xc4e   :  { %5534 = vmatprep.mubr.msk.f32.mxu1 %vm1198_vm2, %v2944_v54  ;;  %5555 = vmatprep.mubr.msk.f32.mxu0 %vm1198_vm2, %v2947_v56  ;;  %v2948_v56 = vcombine.low %v2852_v32, %v2859_v45 }
 0xca2   :  { %v3023_v39 = vpop.permute.xlu1 %3022  ;;  %v3027_v62 = vpop.permute.xlu0 %3026 }
 0xca3   :  { %v3108_v21 = vcombine.low %v3019_v60, %v3027_v62  ;;  %v3109_v20 = vcombine.high %v3019_v60, %v3027_v62  ;;  %v5182_v60 = vcombine.high %v2852_v32, %v2859_v45 }
 0xca5   :  { %v3116_v48 = vrot.slane %v3108_v21, %v5954_v40  ;;  %v3123_v9 = vrot.slane %v3109_v20, %v5954_v40  ;;  %v2955_v20 = vrot.slane %v2948_v56, %v5954_v40  ;;  %v2963_v17 = vrot.slane %v5182_v60, %v5954_v40 }
 0xca6   :  { %v3031_v25 = vpop.permute.xlu1 %3030  ;;  %v3025_v41 = vpop.permute.xlu0 %3024 }
 0xca7   :  { %v3124_v13 = vcombine.low %v3023_v39, %v3031_v25  ;;  %v3125_v27 = vcombine.high %v3023_v39, %v3031_v25  ;;  %v5183_v39 = vcombine.high %v2868_v36, %v2875_v34  ;;  %v3040_v18 = vcombine.low %v3017_v6, %v3025_v41 }
 0xca8   :  { %v3041_v10 = vcombine.high %v3017_v6, %v3025_v41 }
 0xca9   :  { %v3132_v35 = vrot.slane %v3124_v13, %v5954_v40  ;;  %v3139_v31 = vrot.slane %v3125_v27, %v5954_v40  ;;  %v3048_v6 = vrot.slane %v3040_v18, %v5954_v40 }
 0xcaa   :  { %v3021_v37 = vpop.permute.xlu1 %3020 }
 0xcab   :  { %v3140_v28 = vcombine.low %v3116_v48, %v3132_v35  ;;  %v3141_v42 = vcombine.high %v3116_v48, %v3132_v35  ;;  %v3156_v43 = vcombine.low %v3123_v9, %v3139_v31  ;;  %v3157_v54 = vcombine.high %v3123_v9, %v3139_v31 }
 0xcac   :  { %v3055_v48 = vrot.slane %v3041_v10, %v5954_v40  ;;  %v2971_v10 = vrot.slane %v2964_v14, %v5954_v40 }
 0xcad   :  { %v3148_v63 = vrot.slane %v3140_v28, %v5973_v50  ;;  %v3155_v0 = vrot.slane %v3141_v42, %v5973_v50  ;;  %v3164_v3 = vrot.slane %v3156_v43, %v5973_v50  ;;  %v3171_v59 = vrot.slane %v3157_v54, %v5973_v50 }
 0xcae   :  { %v3029_v62 = vpop.permute.xlu1 %3028 }
 0xcaf   :  { %v3244_v19 = vcombine.low %v3148_v63, %v3155_v0  ;;  %v5186_v38 = vcombine.high %v3148_v63, %v3155_v0  ;;  %v3260_v22 = vcombine.low %v3164_v3, %v3171_v59  ;;  %v5187_v21 = vcombine.high %v3164_v3, %v3171_v59 }
 0xcb0   :  { %v3056_v24 = vcombine.low %v3021_v37, %v3029_v62  ;;  %v3057_v25 = vcombine.high %v3021_v37, %v3029_v62  ;;  %v2979_v62 = vrot.slane %v5183_v39, %v5954_v40  ;;  %v2980_v39 = vcombine.low %v2955_v20, %v2963_v17 }
 0xcb1   :  { %v3251_v13 = vrot.slane %v3244_v19, %v5954_v40  ;;  %v3259_v27 = vrot.slane %v5186_v38, %v5954_v40  ;;  %v3267_v32 = vrot.slane %v3260_v22, %v5954_v40  ;;  %v3275_v45 = vrot.slane %v5187_v21, %v5954_v40 }
 0xcb2   :  { %v3064_v9 = vrot.slane %v3056_v24, %v5954_v40  ;;  %v3071_v35 = vrot.slane %v3057_v25, %v5954_v40 }
 0xcb3   :  { %v3276_v31 = vcombine.low %v3251_v13, %v3259_v27  ;;  %v3292_v36 = vcombine.low %v3267_v32, %v3275_v45  ;;  %v3277_v34 = vcombine.high %v3251_v13, %v3259_v27  ;;  %v3293_v37 = vcombine.high %v3267_v32, %v3275_v45 }
 0xcb4   :  { %v3072_v41 = vcombine.low %v3048_v6, %v3064_v9  ;;  %v3073_v28 = vcombine.high %v3048_v6, %v3064_v9  ;;  %v3088_v42 = vcombine.low %v3055_v48, %v3071_v35  ;;  %v3089_v43 = vcombine.high %v3055_v48, %v3071_v35 }
 0xcb5   :  { %v3284_v54 = vrot.slane %v3276_v31, %v5973_v50  ;;  %v3300_v56 = vrot.slane %v3292_v36, %v5973_v50  ;;  %v3291_v60 = vrot.slane %v3277_v34, %v5973_v50  ;;  %v3307_v63 = vrot.slane %v3293_v37, %v5973_v50 }
 0xcb6   :  { %v3080_v0 = vrot.slane %v3072_v41, %v5973_v50  ;;  %v3087_v3 = vrot.slane %v3073_v28, %v5973_v50  ;;  %v3096_v59 = vrot.slane %v3088_v42, %v5973_v50  ;;  %v3103_v18 = vrot.slane %v3089_v43, %v5973_v50 }
 0xcb7   :  { %v3308_v19 = vcombine.low %v3284_v54, %v3300_v56  ;;  %v3311_v38 = vcombine.high %v3291_v60, %v3307_v63  ;;  %v2996_v45 = vcombine.low %v2971_v10, %v2979_v62  ;;  %v2981_v6 = vcombine.high %v2955_v20, %v2963_v17 }
 0xcb8   :  { %v3176_v22 = vcombine.low %v3080_v0, %v3087_v3  ;;  %v5184_v21 = vcombine.high %v3080_v0, %v3087_v3  ;;  %v3192_v24 = vcombine.low %v3096_v59, %v3103_v18  ;;  %v5185_v25 = vcombine.high %v3096_v59, %v3103_v18 }
 0xcb9   :  { %5530 = vmatprep.subr.msk.mxu1 %vm1198_vm2, %v3308_v19  ;;  %5551 = vmatprep.subr.msk.mxu0 %vm1198_vm2, %v3311_v38  ;;  %v2997_v48 = vcombine.high %v2971_v10, %v2979_v62  ;;  %v2988_v42 = vrot.slane %v2980_v39, %v5973_v50  ;;  %v3004_v43 = vrot.slane %v2996_v45, %v5973_v50 }
 0xcba   :  { %v3183_v13 = vrot.slane %v3176_v22, %v5954_v40  ;;  %v3191_v27 = vrot.slane %v5184_v21, %v5954_v40  ;;  %v3199_v32 = vrot.slane %v3192_v24, %v5954_v40  ;;  %v3207_v14 = vrot.slane %v5185_v25, %v5954_v40  ;;  %5531 = vmatpush3.xpose.msk.msra.mxu1 %vm1198_vm2, %v3308_v19 }
 0xcbb   :  { %5552 = vmatpush3.xpose.msk.msra.mxu0 %vm1198_vm2, %v3311_v38  ;;  %v2995_v20 = vrot.slane %v2981_v6, %v5973_v50  ;;  %v3011_v17 = vrot.slane %v2997_v48, %v5973_v50  ;;  %v3309_v59 = vcombine.high %v3284_v54, %v3300_v56  ;;  %v3012_v18 = vcombine.low %v2988_v42, %v3004_v43 }
 0xcbc   :  { %v3208_v9 = vcombine.low %v3183_v13, %v3191_v27  ;;  %v3224_v35 = vcombine.low %v3199_v32, %v3207_v14  ;;  %v3209_v31 = vcombine.high %v3183_v13, %v3191_v27  ;;  %v3225_v36 = vcombine.high %v3199_v32, %v3207_v14 }
 0xcbd   :  { %v3015_v10 = vcombine.high %v2995_v20, %v3011_v17  ;;  %v3310_v54 = vcombine.low %v3291_v60, %v3307_v63  ;;  %v3013_v56 = vcombine.high %v2988_v42, %v3004_v43  ;;  %v3014_v44 = vcombine.low %v2995_v20, %v3011_v17 }
 0xcbe   :  { %v3216_v34 = vrot.slane %v3208_v9, %v5973_v50  ;;  %v3232_v37 = vrot.slane %v3224_v35, %v5973_v50  ;;  %v3223_v41 = vrot.slane %v3209_v31, %v5973_v50  ;;  %v3239_v28 = vrot.slane %v3225_v36, %v5973_v50 }
 0xcc0   :  { %v3240_v0 = vcombine.low %v3216_v34, %v3232_v37  ;;  %v3243_v3 = vcombine.high %v3223_v41, %v3239_v28  ;;  %v3241_v62 = vcombine.high %v3216_v34, %v3232_v37  ;;  %v3242_v19 = vcombine.low %v3223_v41, %v3239_v28 }
 0xcc2   :  { %5532 = vmatprep.subr.msk.mxu1 %vm1198_vm2, %v3240_v0  ;;  %5553 = vmatprep.subr.msk.mxu0 %vm1198_vm2, %v3243_v3 }
 0xcc3   :  { %5533 = vmatpush3.xpose.msk.msra.mxu1 %vm1198_vm2, %v3240_v0  ;;  %5554 = vmatpush3.xpose.msk.msra.mxu0 %vm1198_vm2, %v3243_v3 }
 0xcc4   :  { %5537 = vmatprep.subr.msk.mxu1 %vm1198_vm2, %v3309_v59 }
 0xcc6   :  { %5535 = vmatmul.mubr.msk.f32.vlgmr.msra.gmra.mxu1 %vm1198_vm2, %v3012_v18  ;;  %5556 = vmatmul.mubr.msk.f32.vlgmr.msra.gmra.mxu0 %vm1198_vm2, %v3015_v10 }
 0xcc7   :  { %5538 = vmatpush3.xpose.msk.msra.mxu1 %vm1198_vm2, %v3309_v59  ;;  %5541 = vmatprep.mubr.msk.f32.mxu1 %vm1198_vm2, %v2945_v57 }
 0xcc8   :  { %5539 = vmatprep.subr.msk.mxu1 %vm1198_vm2, %v3241_v62 }
 0xccb   :  { %5540 = vmatpush3.xpose.msk.msra.mxu1 %vm1198_vm2, %v3241_v62 }
 0xccc   :  { %5544 = vmatprep.subr.msk.mxu1 %vm1198_vm2, %v3310_v54 }
 0xcce   :  { %5542 = vmatmul.mubr.msk.f32.vlgmr.msra.gmra.mxu1 %vm1198_vm2, %v3013_v56 }
 0xccf   :  { %5545 = vmatpush3.xpose.msk.msra.mxu1 %vm1198_vm2, %v3310_v54  ;;  %5548 = vmatprep.mubr.msk.f32.mxu1 %vm1198_vm2, %v2946_v58 }
 0xcd0   :  { %5546 = vmatprep.subr.msk.mxu1 %vm1198_vm2, %v3242_v19 }
 0xcd3   :  { %5547 = vmatpush3.xpose.msk.msra.mxu1 %vm1198_vm2, %v3242_v19 }
 0xcd6   :  { %5549 = vmatmul.mubr.msk.f32.vlgmr.msra.gmra.mxu1 %vm1198_vm2, %v3014_v44 }
 0xd86   :  { %v5536_v26 = vpop.f32.mrf.mxu1  ;;  %v5557_v33 = vpop.f32.mrf.mxu0 }
 0xd87   :  { %v3957_v57 = vmul.f32 0.35355338, %v5536_v26  ;;  %v3963_v6 = vmul.f32 0.35355338, %v5557_v33 }
 0xd88   :  { %v3686_v60 = vpop.f32.mrf.mxu1  ;;  %v3947_v25 = vpop.f32.mrf.mxu0 }
 0xd89   :  { %v3956_v63 = vmul.f32 0.35355338, %v3686_v60  ;;  %v3965_v38 = vadd.f32 %v3957_v57, %v6130_v46  ;;  %v3962_v14 = vmul.f32 0.35355338, %v3947_v25  ;;  %v6508_v31 = vadd.f32 %v3963_v6, %v6130_v46 }
 0xd8b   :  { %v3975_v22 = vsel %vm1563_vm5, %v3965_v38, -inf  ;;  %v3964_v21 = vadd.f32 %v3956_v63, %v6133_v52  ;;  %v3970_v9 = vadd.f32 %v3962_v14, %v6133_v52  ;;  %v3993_v36 = vsel %vm1563_vm5, %v6508_v31, -inf }
 0xd8c   :  { %3976 = vmax.xlane.f32.xlu1 %v3975_v22 }
 0xd8d   :  { %v3972_v53 = vsel %vm1563_vm5, %v3964_v21, -inf  ;;  %v3990_v35 = vsel %vm1563_vm5, %v3970_v9, -inf }
 0xd8e   :  { %3973 = vmax.xlane.f32.xlu0 %v3972_v53  ;;  %v5543_v58 = vpop.f32.mrf.mxu1 }
 0xd8f   :  { %v3959_v24 = vmul.f32 0.35355338, %v5543_v58 }
 0xd90   :  { %v3773_v13 = vpop.f32.mrf.mxu1 }
 0xd91   :  { %v3958_v27 = vmul.f32 0.35355338, %v3773_v13  ;;  %v3967_v32 = vadd.f32 %v3959_v24, %v6130_v46 }
 0xd93   :  { %v3981_v39 = vsel %vm1563_vm5, %v3967_v32, -inf  ;;  %v3966_v45 = vadd.f32 %v3958_v27, %v6133_v52 }
 0xd94   :  { %3982 = vmax.xlane.f32.xlu0 %v3981_v39 }
 0xd95   :  { %v3978_v48 = vsel %vm1563_vm5, %v3966_v45, -inf }
 0xd96   :  { %v5550_v34 = vpop.f32.mrf.mxu1 }
 0xd98   :  { %3979 = vmax.xlane.f32.xlu0 %v3978_v48  ;;  %v3860_v37 = vpop.f32.mrf.mxu1 }
 0xd99   :  { %v3960_v41 = vmul.f32 0.35355338, %v3860_v37 }
 0xd9c   :  { %3991 = vmax.xlane.f32.xlu0 %v3990_v35 }
 0xd9d   :  { %3314 = vrot.lane.b32.xlu1 %v6327_v7, %s5855_s30  ;;  %v3961_v7 = vmul.f32 0.35355338, %v5550_v34 }
 0xd9f   :  { %v6525_v28 = vadd.f32 %v3961_v7, %v6130_v46 }
 0xda0   :  { %3994 = vmax.xlane.f32.xlu0 %v3993_v36 }
 0xda1   :  { %3322 = vrot.lane.b32.xlu1 %v6347_v23, %s5855_s30  ;;  %v3987_v23 = vsel %vm1563_vm5, %v6525_v28, -inf }
 0xda5   :  { %3326 = vrot.lane.b32.xlu1 %v6355_v11, %s5855_s30  ;;  %v6530_v11 = vadd.f32 %v3960_v41, %v6133_v52 }
 0xdb6   :  { %3318 = vrot.lane.b32.xlu0 %v6349_v49, %s5855_s30 }
 0xdba   :  { %3312 = vrot.lane.b32.xlu0 %v6333_v5, %s5855_s30  ;;  %v3984_v5 = vsel %vm1563_vm5, %v6530_v11, -inf }
 0xdbe   :  { %3320 = vrot.lane.b32.xlu0 %v6357_v12, %s5855_s30 }
 0xdc9   :  { %3988 = vmax.xlane.f32.xlu1 %v3987_v23 }
 0xdcd   :  { %3985 = vmax.xlane.f32.xlu1 %v3984_v5 }
 0xdde   :  { %3316 = vrot.lane.b32.xlu1 %v6363_v29, %s5855_s30 }
 0xe15   :  { %v3977_v49 = vpop.xlane.xlu1 %3976 }
 0xe16   :  { %v3997_v12 = vsub.f32 %v3965_v38, %v3977_v49 }
 0xe17   :  { %v3974_v42 = vpop.xlane.xlu0 %3973 }
 0xe18   :  { %v4006_v43 = vmul.f32 1.442695, %v3997_v12  ;;  %v3996_v46 = vsub.f32 %v3964_v21, %v3974_v42 }
 0xe19   :  { %v3315_v17 = vpop.permute.xlu1 %3314 }
 0xe1a   :  { %5711 = vpow2.f32 %v4006_v43  ;;  %v4004_v0 = vmul.f32 1.442695, %v3996_v46 }
 0xe1c   :  { %5713 = vpow2.f32 %v4004_v0 }
 0xe1d   :  { %v3983_v3 = vpop.xlane.xlu0 %3982  ;;  %v3323_v29 = vpop.permute.xlu1 %3322 }
 0xe1e   :  { %v3999_v20 = vsub.f32 %v3967_v32, %v3983_v3  ;;  %v3404_v63 = vcombine.low %v3315_v17, %v3323_v29  ;;  %v3405_v38 = vcombine.high %v3315_v17, %v3323_v29 }
 0xe20   :  { %v4010_v52 = vmul.f32 1.442695, %v3999_v20  ;;  %v3412_v24 = vrot.slane %v3404_v63, %v5954_v40  ;;  %v3419_v25 = vrot.slane %v3405_v38, %v5954_v40 }
 0xe21   :  { %v3980_v59 = vpop.xlane.xlu0 %3979  ;;  %v3327_v22 = vpop.permute.xlu1 %3326 }
 0xe22   :  { %5715 = vpow2.f32 %v4010_v52  ;;  %v3998_v18 = vsub.f32 %v3966_v45, %v3980_v59 }
 0xe24   :  { %v4008_v56 = vmul.f32 1.442695, %v3998_v18 }
 0xe25   :  { %v3992_v10 = vpop.xlane.xlu0 %3991 }
 0xe26   :  { %v4002_v62 = vsub.f32 %v3970_v9, %v3992_v10 }
 0xe27   :  { %v6536_v54 = vpop.eup %5711 }
 0xe28   :  { %v4016_v19 = vmul.f32 1.442695, %v4002_v62  ;;  %v4023_v44 = vsel %vm1563_vm5, %v6536_v54, 0.0 }
 0xe29   :  { %v6540_v26 = vpop.eup %5713  ;;  %4024 = vadd.xlane.f32.xlu0 %v4023_v44  ;;  %v6542_v57 = vpop.xlane.xlu0 %3994 }
 0xe2a   :  { %5717 = vpow2.f32 %v4016_v19  ;;  %v4020_v60 = vsel %vm1563_vm5, %v6540_v26, 0.0 }
 0xe2b   :  { %4021 = vadd.xlane.f32.xlu1 %v4020_v60  ;;  %5719 = vpow2.f32 %v4008_v56 }
 0xe2d   :  { %v3319_v21 = vpop.permute.xlu0 %3318 }
 0xe2e   :  { %v3420_v33 = vcombine.low %v3319_v21, %v3327_v22  ;;  %v3421_v53 = vcombine.high %v3319_v21, %v3327_v22  ;;  %v4003_v21 = vsub.f32 %v6508_v31, %v6542_v57 }
 0xe2f   :  { %v6546_v58 = vpop.eup %5715 }
 0xe30   :  { %v3428_v13 = vrot.slane %v3420_v33, %v5954_v40  ;;  %v3435_v27 = vrot.slane %v3421_v53, %v5954_v40  ;;  %v4029_v32 = vsel %vm1563_vm5, %v6546_v58, 0.0 }
 0xe31   :  { %4030 = vadd.xlane.f32.xlu0 %v4029_v32  ;;  %v3313_v32 = vpop.permute.xlu0 %3312 }
 0xe32   :  { %v3436_v14 = vcombine.low %v3412_v24, %v3428_v13  ;;  %v3437_v39 = vcombine.high %v3412_v24, %v3428_v13  ;;  %v3452_v45 = vcombine.low %v3419_v25, %v3435_v27  ;;  %v3453_v6 = vcombine.high %v3419_v25, %v3435_v27 }
 0xe33   :  { %v4018_v24 = vmul.f32 1.442695, %v4003_v21 }
 0xe34   :  { %v3444_v48 = vrot.slane %v3436_v14, %v5973_v50  ;;  %v3451_v9 = vrot.slane %v3437_v39, %v5973_v50  ;;  %v3460_v35 = vrot.slane %v3452_v45, %v5973_v50  ;;  %v3467_v36 = vrot.slane %v3453_v6, %v5973_v50 }
 0xe35   :  { %v3321_v6 = vpop.permute.xlu0 %3320 }
 0xe36   :  { %v3540_v34 = vcombine.low %v3444_v48, %v3451_v9  ;;  %v5190_v7 = vcombine.high %v3444_v48, %v3451_v9  ;;  %v3556_v37 = vcombine.low %v3460_v35, %v3467_v36  ;;  %v5191_v41 = vcombine.high %v3460_v35, %v3467_v36 }
 0xe37   :  { %v6558_v23 = vpop.eup %5717  ;;  %v3336_v9 = vcombine.low %v3313_v32, %v3321_v6  ;;  %v3337_v35 = vcombine.high %v3313_v32, %v3321_v6 }
 0xe38   :  { %v4038_v5 = vsel %vm1563_vm5, %v6558_v23, 0.0  ;;  %v3547_v49 = vrot.slane %v3540_v34, %v5954_v40  ;;  %v3555_v12 = vrot.slane %v5190_v7, %v5954_v40  ;;  %v3563_v42 = vrot.slane %v3556_v37, %v5954_v40  ;;  %v6565_v43 = vpop.eup %5719 }
 0xe39   :  { %4039 = vadd.xlane.f32.xlu1 %v4038_v5  ;;  %v3571_v46 = vrot.slane %v5191_v41, %v5954_v40  ;;  %v4026_v17 = vsel %vm1563_vm5, %v6565_v43, 0.0  ;;  %v3344_v41 = vrot.slane %v3336_v9, %v5954_v40  ;;  %v3351_v5 = vrot.slane %v3337_v35, %v5954_v40 }
 0xe3a   :  { %v3572_v0 = vcombine.low %v3547_v49, %v3555_v12  ;;  %v3573_v3 = vcombine.high %v3547_v49, %v3555_v12 }
 0xe3b   :  { %v3588_v20 = vcombine.low %v3563_v42, %v3571_v46  ;;  %v3589_v52 = vcombine.high %v3563_v42, %v3571_v46 }
 0xe3c   :  { %v3580_v59 = vrot.slane %v3572_v0, %v5973_v50  ;;  %v3587_v18 = vrot.slane %v3573_v3, %v5973_v50 }
 0xe3d   :  { %4027 = vadd.xlane.f32.xlu1 %v4026_v17  ;;  %v3596_v10 = vrot.slane %v3588_v20, %v5973_v50  ;;  %v3603_v62 = vrot.slane %v3589_v52, %v5973_v50 }
 0xe3f   :  { %v3604_v29 = vcombine.low %v3580_v59, %v3596_v10  ;;  %v3606_v56 = vcombine.low %v3587_v18, %v3603_v62  ;;  %v6574_v19 = vcombine.high %v3580_v59, %v3596_v10  ;;  %v6576_v44 = vcombine.high %v3587_v18, %v3603_v62 }
 0xe41   :  { %5558 = vmatprep.subr.mxu1 %v3604_v29  ;;  %5572 = vmatprep.subr.mxu0 %v3606_v56 }
 0xe42   :  { %5559 = vmatpush3.msra.mxu1 %v3604_v29  ;;  %5573 = vmatpush3.msra.mxu0 %v3606_v56 }
 0xe4e   :  { %3324 = vrot.lane.b32.xlu1 %v6371_v61, %s5855_s30 }
 0xe52   :  { %v3989_v60 = vpop.xlane.xlu1 %3988 }
 0xe53   :  { %v4001_v63 = vsub.f32 %v6525_v28, %v3989_v60 }
 0xe55   :  { %v4014_v33 = vmul.f32 1.442695, %v4001_v63 }
 0xe56   :  { %v3986_v38 = vpop.xlane.xlu1 %3985 }
 0xe57   :  { %v4000_v22 = vsub.f32 %v6530_v11, %v3986_v38 }
 0xe59   :  { %v4012_v53 = vmul.f32 1.442695, %v4000_v22 }
 0xe5a   :  { %v3317_v57 = vpop.permute.xlu1 %3316 }
 0xe5b   :  { %5721 = vpow2.f32 %v4012_v53 }
 0xe5c   :  { %5723 = vpow2.f32 %v4014_v33 }
 0xe5d   :  { %5725 = vpow2.f32 %v4018_v24 }
 0xe68   :  { %v6584_v25 = vpop.eup %5721 }
 0xe69   :  { %v4032_v61 = vsel %vm1563_vm5, %v6584_v25, 0.0  ;;  %v6588_v13 = vpop.eup %5723 }
 0xe6a   :  { %4033 = vadd.xlane.f32.xlu0 %v4032_v61  ;;  %v4035_v28 = vsel %vm1563_vm5, %v6588_v13, 0.0  ;;  %v6592_v11 = vpop.eup %5725 }
 0xe6b   :  { %v4041_v31 = vsel %vm1563_vm5, %v6592_v11, 0.0 }
 0xe6e   :  { %4036 = vadd.xlane.f32.xlu0 %v4035_v28 }
 0xe72   :  { %4042 = vadd.xlane.f32.xlu1 %v4041_v31 }
 0xeb2   :  { %v4025_v36 = vpop.xlane.xlu0 %4024 }
 0xeb4   :  { %v4022_v27 = vpop.xlane.xlu1 %4021 }
 0xeb5   :  { %5727 = vrcp.f32 %v4022_v27 }
 0xeb6   :  { %5729 = vrcp.f32 %v4025_v36 }
 0xeba   :  { %v4031_v49 = vpop.xlane.xlu0 %4030 }
 0xec2   :  { %v5728_v14 = vpop.eup %5727  ;;  %v4040_v39 = vpop.xlane.xlu1 %4039 }
 0xec3   :  { %v4045_v45 = vmul.f32 %v5728_v14, %v6540_v26 }
 0xec5   :  { %5562 = vmatprep.mubr.msk.f32.mxu1 %vm1563_vm5, %v4045_v45 }
 0xec6   :  { %v4028_v48 = vpop.xlane.xlu1 %4027 }
 0xec7   :  { %5731 = vrcp.f32 %v4028_v48 }
 0xec8   :  { %5733 = vrcp.f32 %v4031_v49 }
 0xec9   :  { %5735 = vrcp.f32 %v4040_v39 }
 0xeca   :  { %v3325_v34 = vpop.permute.xlu1 %3324 }
 0xecb   :  { %v3352_v7 = vcombine.low %v3317_v57, %v3325_v34  ;;  %v3353_v37 = vcombine.high %v3317_v57, %v3325_v34  ;;  %v5730_v57 = vpop.eup %5729 }
 0xecc   :  { %v4047_v45 = vmul.f32 %v5730_v57, %v6536_v54 }
 0xecd   :  { %v3360_v12 = vrot.slane %v3352_v7, %v5954_v40  ;;  %v3367_v26 = vrot.slane %v3353_v37, %v5954_v40 }
 0xecf   :  { %v3368_v42 = vcombine.low %v3344_v41, %v3360_v12  ;;  %v3369_v46 = vcombine.high %v3344_v41, %v3360_v12  ;;  %v3384_v0 = vcombine.low %v3351_v5, %v3367_v26  ;;  %v3385_v3 = vcombine.high %v3351_v5, %v3367_v26 }
 0xed1   :  { %v3376_v20 = vrot.slane %v3368_v42, %v5973_v50  ;;  %v3383_v52 = vrot.slane %v3369_v46, %v5973_v50  ;;  %v3392_v17 = vrot.slane %v3384_v0, %v5973_v50  ;;  %v3399_v59 = vrot.slane %v3385_v3, %v5973_v50 }
 0xed3   :  { %v3472_v18 = vcombine.low %v3376_v20, %v3383_v52  ;;  %v5188_v10 = vcombine.high %v3376_v20, %v3383_v52  ;;  %v3488_v62 = vcombine.low %v3392_v17, %v3399_v59  ;;  %v5189_v29 = vcombine.high %v3392_v17, %v3399_v59 }
 0xed4   :  { %v5732_v27 = vpop.eup %5731 }
 0xed5   :  { %v3479_v56 = vrot.slane %v3472_v18, %v5954_v40  ;;  %v3487_v60 = vrot.slane %v5188_v10, %v5954_v40  ;;  %v3495_v63 = vrot.slane %v3488_v62, %v5954_v40  ;;  %v3503_v38 = vrot.slane %v5189_v29, %v5954_v40  ;;  %v5734_v39 = vpop.eup %5733 }
 0xed6   :  { %v4049_v6 = vmul.f32 %v5732_v27, %v6565_v43  ;;  %v5736_v48 = vpop.eup %5735  ;;  %v4051_v35 = vmul.f32 %v5734_v39, %v6546_v58 }
 0xed7   :  { %v3504_v22 = vcombine.low %v3479_v56, %v3487_v60  ;;  %v3520_v21 = vcombine.low %v3495_v63, %v3503_v38  ;;  %v3505_v33 = vcombine.high %v3479_v56, %v3487_v60  ;;  %v3521_v53 = vcombine.high %v3495_v63, %v3503_v38 }
 0xed8   :  { %v4057_v54 = vmul.f32 %v5736_v48, %v6558_v23 }
 0xed9   :  { %v3512_v24 = vrot.slane %v3504_v22, %v5973_v50  ;;  %v3528_v61 = vrot.slane %v3520_v21, %v5973_v50  ;;  %v3519_v28 = vrot.slane %v3505_v33, %v5973_v50  ;;  %v3535_v31 = vrot.slane %v3521_v53, %v5973_v50 }
 0xedb   :  { %v3536_v32 = vcombine.low %v3512_v24, %v3528_v61  ;;  %v3538_v14 = vcombine.low %v3519_v28, %v3535_v31  ;;  %v3537_v9 = vcombine.high %v3512_v24, %v3528_v61  ;;  %v3539_v43 = vcombine.high %v3519_v28, %v3535_v31 }
 0xedd   :  { %5560 = vmatprep.subr.mxu1 %v3536_v32  ;;  %5574 = vmatprep.subr.mxu0 %v3538_v14 }
 0xede   :  { %5561 = vmatpush3.msra.mxu1 %v3536_v32  ;;  %5575 = vmatpush3.msra.mxu0 %v3538_v14 }
 0xedf   :  { %5563 = vmatmul.mubr.msk.f32.vlgmr.msra.gmra.mxu1 %vm1563_vm5, %v4047_v45  ;;  %5565 = vmatprep.subr.mxu1 %v6574_v19 }
 0xee0   :  { %5566 = vmatpush3.msra.mxu1 %v6574_v19  ;;  %5569 = vmatprep.mubr.msk.f32.mxu1 %vm1563_vm5, %v4049_v6 }
 0xee1   :  { %5567 = vmatprep.subr.mxu1 %v3537_v9 }
 0xee2   :  { %5568 = vmatpush3.msra.mxu1 %v3537_v9 }
 0xee3   :  { %5570 = vmatmul.mubr.msk.f32.vlgmr.msra.gmra.mxu1 %vm1563_vm5, %v4051_v35  ;;  %5579 = vmatprep.subr.mxu1 %v6576_v44 }
 0xee4   :  { %5580 = vmatpush3.msra.mxu1 %v6576_v44  ;;  %5583 = vmatprep.mubr.msk.f32.mxu1 %vm1563_vm5, %v4057_v54 }
 0xee5   :  { %5581 = vmatprep.subr.mxu1 %v3539_v43 }
 0xee6   :  { %5582 = vmatpush3.msra.mxu1 %v3539_v43 }
 0xef3   :  { %v4034_v19 = vpop.xlane.xlu0 %4033 }
 0xef4   :  { %5737 = vrcp.f32 %v4034_v19 }
 0xef7   :  { %v4037_v36 = vpop.xlane.xlu0 %4036 }
 0xef8   :  { %5739 = vrcp.f32 %v4037_v36  ;;  %v2618_v36 = vld [vmem:[#allocation5 + $0x158] sm:$0xff] }
 0xef9   :  { %5586 = vmatprep.subr.mxu0 %v2618_v36 }
 0xefb   :  { %v4043_v34 = vpop.xlane.xlu1 %4042 }
 0xefc   :  { %5741 = vrcp.f32 %v4043_v34 }
 0xf01   :  { %v5738_v58 = vpop.eup %5737 }
 0xf02   :  { %v4053_v23 = vmul.f32 %v5738_v58, %v6584_v25 }
 0xf04   :  { %5576 = vmatprep.mubr.msk.f32.mxu0 %vm1563_vm5, %v4053_v23 }
 0xf05   :  { %v5740_v7 = vpop.eup %5739 }
 0xf06   :  { %v4055_v37 = vmul.f32 %v5740_v7, %v6588_v13 }
 0xf08   :  { %5577 = vmatmul.mubr.msk.f32.vlgmr.msra.gmra.mxu0 %vm1563_vm5, %v4055_v37 }
 0xf09   :  { %v5742_v44 = vpop.eup %5741  ;;  %5587 = vmatpush3.msra.mxu0 %v2618_v36 }
 0xf0a   :  { %v4059_v41 = vmul.f32 %v5742_v44, %v6592_v11 }
 0xf0c   :  { %5584 = vmatmul.mubr.msk.f32.vlgmr.msra.gmra.mxu1 %vm1563_vm5, %v4059_v41 }
 0xf9f   :  { %v5564_v5 = vpop.f32.mrf.mxu1 }
 0xfa1   :  { %v4132_v49 = vpop.f32.mrf.mxu1 }
 0xfa3   :  { %v5571_v12 = vpop.f32.mrf.mxu1 }
 0xfa5   :  { %v4213_v42 = vpop.f32.mrf.mxu1 }
 0xfc8   :  { %v5578_v26 = vpop.f32.mrf.mxu0 }
 0xfc9   :  { %v4452_v46 = vcombine.low %v5564_v5, %v5578_v26  ;;  %v4453_v0 = vcombine.high %v5564_v5, %v5578_v26 }
 0xfca   :  { %v4294_v25 = vpop.f32.mrf.mxu0 }
 0xfcb   :  { %v4460_v13 = vrot.slane %v4452_v46, %v5954_v40  ;;  %v4467_v17 = vrot.slane %v4453_v0, %v5954_v40  ;;  %v4384_v59 = vcombine.low %v4132_v49, %v4294_v25  ;;  %v4385_v18 = vcombine.high %v4132_v49, %v4294_v25  ;;  %v2617_v49 = vld [vmem:[#allocation5 + $0x150] sm:$0xff] }
 0xfcc   :  { %v5585_v3 = vpop.f32.mrf.mxu1  ;;  %5588 = vmatprep.subr.mxu0 %v2617_v49 }
 0xfcd   :  { %v4468_v20 = vcombine.low %v5571_v12, %v5585_v3  ;;  %v4469_v52 = vcombine.high %v5571_v12, %v5585_v3  ;;  %v4392_v21 = vrot.slane %v4384_v59, %v5954_v40  ;;  %v4399_v33 = vrot.slane %v4385_v18, %v5954_v40  ;;  %5589 = vmatpush3.msra.mxu0 %v2617_v49 }
 0xfce   :  { %v4375_v11 = vpop.f32.mrf.mxu1 }
 0xfcf   :  { %v4476_v10 = vrot.slane %v4468_v20, %v5954_v40  ;;  %v4483_v62 = vrot.slane %v4469_v52, %v5954_v40  ;;  %v4400_v29 = vcombine.low %v4213_v42, %v4375_v11  ;;  %v4401_v56 = vcombine.high %v4213_v42, %v4375_v11  ;;  %v2616_v52 = vld [vmem:[#allocation5 + $0x148] sm:$0xff] }
 0xfd0   :  { %5590 = vmatprep.subr.mxu0 %v2616_v52 }
 0xfd1   :  { %v4484_v60 = vcombine.low %v4460_v13, %v4476_v10  ;;  %v4485_v63 = vcombine.high %v4460_v13, %v4476_v10  ;;  %v4500_v38 = vcombine.low %v4467_v17, %v4483_v62  ;;  %v4501_v22 = vcombine.high %v4467_v17, %v4483_v62  ;;  %5591 = vmatpush3.msra.mxu0 %v2616_v52  ;;  %v2615_v62 = vld [vmem:[#allocation5 + $0x140] sm:$0xff] }
 0xfd2   :  { %v4408_v53 = vrot.slane %v4400_v29, %v5954_v40  ;;  %v4415_v24 = vrot.slane %v4401_v56, %v5954_v40  ;;  %5592 = vmatprep.subr.mxu0 %v2615_v62  ;;  %v2619_v52 = vld [vmem:[#allocation5 + $0x160] sm:$0xff] }
 0xfd3   :  { %v4492_v61 = vrot.slane %v4484_v60, %v5973_v50  ;;  %v4499_v28 = vrot.slane %v4485_v63, %v5973_v50  ;;  %v4508_v31 = vrot.slane %v4500_v38, %v5973_v50  ;;  %v4515_v57 = vrot.slane %v4501_v22, %v5973_v50  ;;  %5593 = vmatpush3.msra.mxu0 %v2615_v62  ;;  %v2632_v62 = vld [vmem:[#allocation5 + $0x1c8] sm:$0xff] }
 0xfd4   :  { %v4416_v27 = vcombine.low %v4392_v21, %v4408_v53  ;;  %v4417_v32 = vcombine.high %v4392_v21, %v4408_v53  ;;  %v4432_v14 = vcombine.low %v4399_v33, %v4415_v24  ;;  %v4433_v39 = vcombine.high %v4399_v33, %v4415_v24 }
 0xfd5   :  { %v4588_v45 = vcombine.low %v4492_v61, %v4499_v28  ;;  %v5218_v6 = vcombine.high %v4492_v61, %v4499_v28  ;;  %v4604_v48 = vcombine.low %v4508_v31, %v4515_v57  ;;  %v5219_v9 = vcombine.high %v4508_v31, %v4515_v57 }
 0xfd6   :  { %v4424_v35 = vrot.slane %v4416_v27, %v5973_v50  ;;  %v4431_v54 = vrot.slane %v4417_v32, %v5973_v50  ;;  %v4440_v43 = vrot.slane %v4432_v14, %v5973_v50  ;;  %v4447_v19 = vrot.slane %v4433_v39, %v5973_v50 }
 0xfd7   :  { %v4595_v34 = vrot.slane %v4588_v45, %v5954_v40  ;;  %v4603_v58 = vrot.slane %v5218_v6, %v5954_v40  ;;  %v4611_v23 = vrot.slane %v4604_v48, %v5954_v40  ;;  %v4619_v7 = vrot.slane %v5219_v9, %v5954_v40 }
 0xfd8   :  { %v4520_v37 = vcombine.low %v4424_v35, %v4431_v54  ;;  %v5216_v44 = vcombine.high %v4424_v35, %v4431_v54  ;;  %v4536_v41 = vcombine.low %v4440_v43, %v4447_v19  ;;  %v5217_v5 = vcombine.high %v4440_v43, %v4447_v19  ;;  %v6678_v43 = vld [vmem:[#allocation7 + $0x8] sm:$0xff] }
 0xfd9   :  { %v4620_v12 = vcombine.low %v4595_v34, %v4603_v58  ;;  %v4636_v26 = vcombine.low %v4611_v23, %v4619_v7  ;;  %v4621_v42 = vcombine.high %v4595_v34, %v4603_v58  ;;  %v4637_v46 = vcombine.high %v4611_v23, %v4619_v7 }
 0xfda   :  { %v4527_v0 = vrot.slane %v4520_v37, %v5954_v40  ;;  %v4535_v25 = vrot.slane %v5216_v44, %v5954_v40  ;;  %v4543_v3 = vrot.slane %v4536_v41, %v5954_v40  ;;  %v4551_v20 = vrot.slane %v5217_v5, %v5954_v40 }
 0xfdb   :  { %v4628_v13 = vrot.slane %v4620_v12, %v5973_v50  ;;  %v4644_v17 = vrot.slane %v4636_v26, %v5973_v50  ;;  %v4635_v60 = vrot.slane %v4621_v42, %v5973_v50  ;;  %v4651_v63 = vrot.slane %v4637_v46, %v5973_v50 }
 0xfdc   :  { %v4552_v59 = vcombine.low %v4527_v0, %v4535_v25  ;;  %v4568_v18 = vcombine.low %v4543_v3, %v4551_v20  ;;  %v4553_v11 = vcombine.high %v4527_v0, %v4535_v25  ;;  %v4569_v10 = vcombine.high %v4543_v3, %v4551_v20  ;;  %v2622_v25 = vld [vmem:[#allocation5 + $0x178] sm:$0xff]  ;;  %v2621_v3 = vld [vmem:[#allocation5 + $0x170] sm:$0xff]  ;;  %v2620_v20 = vld [vmem:[#allocation5 + $0x168] sm:$0xff] }
 0xfdd   :  { %v4653_v29 = vcombine.high %v4628_v13, %v4644_v17  ;;  %v4652_v56 = vcombine.low %v4628_v13, %v4644_v17  ;;  %v4654_v24 = vcombine.low %v4635_v60, %v4651_v63  ;;  %v4655_v28 = vcombine.high %v4635_v60, %v4651_v63  ;;  %5597 = vmatprep.subr.mxu1 %v2622_v25  ;;  %v2638_v13 = vld [vmem:[#allocation5 + $0x1f8] sm:$0xff]  ;;  %v2637_v17 = vld [vmem:[#allocation5 + $0x1f0] sm:$0xff]  ;;  %v2628_v63 = vld [vmem:[#allocation5 + $0x1a8] sm:$0xff] }
 0xfde   :  { %v4560_v40 = vrot.slane %v4552_v59, %v5973_v50  ;;  %v4576_v38 = vrot.slane %v4568_v18, %v5973_v50  ;;  %v4567_v33 = vrot.slane %v4553_v11, %v5973_v50  ;;  %v4583_v53 = vrot.slane %v4569_v10, %v5973_v50  ;;  %5598 = vmatpush3.msra.mxu1 %v2622_v25  ;;  %v2636_v59 = vld [vmem:[#allocation5 + $0x1e8] sm:$0xff]  ;;  %v2635_v18 = vld [vmem:[#allocation5 + $0x1e0] sm:$0xff]  ;;  %v2634_v11 = vld [vmem:[#allocation5 + $0x1d8] sm:$0xff] }
 0xfdf   :  { %4660 = vrot.lane.b32.xlu1 %v4653_v29, %s5847_s18  ;;  %v4689_v19 = vrot.slane %v6678_v43, %v2281_v4  ;;  %5599 = vmatprep.subr.mxu1 %v2621_v3  ;;  %v2633_v10 = vld [vmem:[#allocation5 + $0x1d0] sm:$0xff]  ;;  %v2631_v29 = vld [vmem:[#allocation5 + $0x1c0] sm:$0xff] }
 0xfe0   :  { %v4585_v22 = vcombine.high %v4560_v40, %v4576_v38  ;;  %v4584_v21 = vcombine.low %v4560_v40, %v4576_v38  ;;  %v4586_v61 = vcombine.low %v4567_v33, %v4583_v53  ;;  %v4587_v31 = vcombine.high %v4567_v33, %v4583_v53  ;;  %5600 = vmatpush3.msra.mxu1 %v2621_v3  ;;  %v2629_v60 = vld [vmem:[#allocation5 + $0x1b0] sm:$0xff]  ;;  %v2627_v40 = vld [vmem:[#allocation5 + $0x1a0] sm:$0xff] }
 0xfe1   :  { %5601 = vmatprep.subr.mxu1 %v2620_v20  ;;  %5608 = vmatprep.subr.mxu0 %v2638_v13 }
 0xfe2   :  { %4658 = vrot.lane.b32.xlu0 %v4585_v22, %s5847_s18  ;;  %5602 = vmatpush3.msra.mxu1 %v2620_v20 }
 0xfe3   :  { %4668 = vrot.lane.b32.xlu1 %v4654_v24, %s5857_s4  ;;  %5603 = vmatprep.subr.mxu1 %v2619_v52 }
 0xfe4   :  { %5604 = vmatpush3.msra.mxu1 %v2619_v52  ;;  %v5859_v52 = vmov 0.0  }
 0xfe5   :  { %5643 = vmatprep.subr.mxu1 %v5859_v52 }
 0xfe6   :  { %4666 = vrot.lane.b32.xlu0 %v4586_v61, %s5857_s4  ;;  %v4802_v61 = vrot.slane %v6678_v43, %v2395_v30  ;;  %v2625_v30 = vld [vmem:[#allocation5 + $0x190] sm:$0xff] }
 0xfe7   :  { %4676 = vrot.lane.b32.xlu1 %v4655_v28, %s5858_s5 }
 0xfea   :  { %4674 = vrot.lane.b32.xlu0 %v4587_v31, %s5858_s5 }
0x1051   :  { %v4661_v57 = vpop.permute.xlu1 %4660 }
0x1052   :  { %v4681_v45 = vsel %vm1198_vm2, %v4652_v56, %v4661_v57  ;;  %v2630_v56 = vld [vmem:[#allocation5 + $0x1b8] sm:$0xff]  ;;  %v4808_v57 = vrot.slane %v6678_v43, %v2401_v51  ;;  %v2623_v51 = vld [vmem:[#allocation5 + $0x180] sm:$0xff] }
0x1054   :  { %v4659_v27 = vpop.permute.xlu0 %4658 }
0x1055   :  { %v4669_v32 = vpop.permute.xlu1 %4668  ;;  %v4680_v50 = vsel %vm1198_vm2, %v4584_v21, %v4659_v27 }
0x1056   :  { %v4683_v9 = vsel %vm1563_vm5, %v4681_v45, %v4669_v32 }
0x1058   :  { %v4667_v14 = vpop.permute.xlu0 %4666 }
0x1059   :  { %v4677_v39 = vpop.permute.xlu1 %4676  ;;  %v4682_v6 = vsel %vm1563_vm5, %v4680_v50, %v4667_v14 }
0x105a   :  { %v4685_v54 = vsel %vm2276_vm6, %v4683_v9, %v4677_v39  ;;  %v58_v9 = vld [vmem:[#allocation7 + $0x10] sm:$0xff] }
0x105c   :  { %v4675_v48 = vpop.permute.xlu0 %4674 }
0x105d   :  { %v4684_v35 = vsel %vm2276_vm6, %v4682_v6, %v4675_v48  ;;  %v2626_v6 = vld [vmem:[#allocation5 + $0x198] sm:$0xff]  ;;  %v2624_v48 = vld [vmem:[#allocation5 + $0x188] sm:$0xff] }
0x105e   :  { %5594 = vmatprep.mubr.msk.f32.mxu0 %vm232_vm1, %v4684_v35  ;;  %v4814_v35 = vrot.slane %v58_v9, %v2407_v8 }
0x105f   :  { %5595 = vmatmul.mubr.msk.f32.vlgmr.msra.gmra.mxu0 %vm232_vm1, %v4685_v54 }
0x1060   :  { %5609 = vmatpush3.msra.mxu0 %v2638_v13  ;;  %v5861_v13 = vmov 0  }
0x1061   :  { %5610 = vmatprep.subr.mxu0 %v2637_v17  ;;  %5669 = vset.pattern.permute.xlu1 %v5861_v13 }
0x1062   :  { %5611 = vmatpush3.msra.mxu0 %v2637_v17  ;;  %5670 = vset.pattern.permute.xlu0 %v5861_v13  ;;  %v5757_v17 = vld [vmem:[#allocation7] sm:$0xff] }
0x1063   :  { %5612 = vmatprep.subr.mxu0 %v2636_v59 }
0x1064   :  { %5613 = vmatpush3.msra.mxu0 %v2636_v59 }
0x1065   :  { %5614 = vmatprep.subr.mxu0 %v2635_v18 }
0x1066   :  { %5615 = vmatpush3.msra.mxu0 %v2635_v18 }
0x1067   :  { %5616 = vmatprep.subr.mxu0 %v2634_v11 }
0x1068   :  { %5617 = vmatpush3.msra.mxu0 %v2634_v11 }
0x1069   :  { %5618 = vmatprep.subr.mxu0 %v2633_v10 }
0x106a   :  { %5619 = vmatpush3.msra.mxu0 %v2633_v10 }
0x106b   :  { %5620 = vmatprep.subr.mxu0 %v2632_v62 }
0x106c   :  { %5621 = vmatpush3.msra.mxu0 %v2632_v62 }
0x106d   :  { %5622 = vmatprep.subr.mxu0 %v2631_v29 }
0x106e   :  { %5623 = vmatpush3.msra.mxu0 %v2631_v29 }
0x106f   :  { %5624 = vmatprep.subr.mxu0 %v2630_v56 }
0x1070   :  { %5625 = vmatpush3.msra.mxu0 %v2630_v56  ;;  %v5008_v56 = vrot.slane %v6678_v43, %v2601_v47 }
0x1071   :  { %5626 = vmatprep.subr.mxu0 %v2629_v60 }
0x1072   :  { %5627 = vmatpush3.msra.mxu0 %v2629_v60 }
0x1073   :  { %5628 = vmatprep.subr.mxu0 %v2628_v63 }
0x1074   :  { %5629 = vmatpush3.msra.mxu0 %v2628_v63  ;;  %v5014_v63 = vrot.slane %v6678_v43, %v2607_v55 }
0x1075   :  { %5630 = vmatprep.subr.mxu0 %v2627_v40 }
0x1076   :  { %5631 = vmatpush3.msra.mxu0 %v2627_v40 }
0x1077   :  { %5632 = vmatprep.subr.mxu0 %v2626_v6 }
0x1078   :  { %5633 = vmatpush3.msra.mxu0 %v2626_v6 }
0x1079   :  { %5634 = vmatprep.subr.mxu0 %v2625_v30 }
0x107a   :  { %5635 = vmatpush3.msra.mxu0 %v2625_v30 }
0x107b   :  { %5636 = vmatprep.subr.mxu0 %v2624_v48 }
0x107c   :  { %5637 = vmatpush3.msra.mxu0 %v2624_v48 }
0x107d   :  { %5638 = vmatprep.subr.mxu0 %v2623_v51 }
0x107e   :  { %5639 = vmatpush3.msra.mxu0 %v2623_v51 }
0x111f   :  { %v5596_v36 = vpop.f32.mrf.mxu0 }
0x1120   :  { %v4768_v34 = vadd.f32 %v5596_v36, %v4689_v19 }
0x1121   :  { %v4762_v58 = vpop.f32.mrf.mxu0 }
0x1122   :  { %v4763_v23 = vadd.f32 %v4762_v58, %v4689_v19  ;;  %v4772_v7 = vadd.f32 %v4768_v34, %v6318_v2 }
0x1124   :  { %v4776_v37 = vsel %vm232_vm1, %v4772_v7, 0.0  ;;  %v4771_v44 = vadd.f32 %v4763_v23, %v6316_v1 }
0x1125   :  { %4777 = vadd.xlane.f32.xlu1 %v4776_v37 }
0x1126   :  { %v4773_v41 = vsel %vm232_vm1, %v4771_v44, 0.0 }
0x1127   :  { %4774 = vadd.xlane.f32.xlu0 %v4773_v41 }
0x11ae   :  { %v4778_v5 = vpop.xlane.xlu1 %4777 }
0x11af   :  { %v4780_v49 = vmul.f32 0.03125, %v4778_v5 }
0x11b0   :  { %v4775_v12 = vpop.xlane.xlu0 %4774 }
0x11b1   :  { %v4779_v26 = vmul.f32 0.03125, %v4775_v12  ;;  %v6687_v42 = vsub.f32 %v4772_v7, %v4780_v49  ;;  %v4901_v7 = vrot.slane %v58_v9, %v5901_v16 }
0x11b3   :  { %v6689_v4 = vsub.f32 %v4771_v44, %v4779_v26  ;;  %v4784_v1 = vmul.f32 %v6687_v42, %v6687_v42 }
0x11b5   :  { %v4783_v46 = vmul.f32 %v6689_v4, %v6689_v4  ;;  %v4788_v0 = vsel %vm232_vm1, %v4784_v1, 0.0 }
0x11b7   :  { %v4785_v2 = vsel %vm232_vm1, %v4783_v46, 0.0 }
0x11b8   :  { %4786 = vadd.xlane.f32.xlu0 %v4785_v2 }
0x11bc   :  { %4789 = vadd.xlane.f32.xlu0 %v4788_v0 }
0x1241   :  { %v4787_v38 = vpop.xlane.xlu0 %4786 }
0x1242   :  { %v4791_v22 = vmul.f32 0.03125, %v4787_v38 }
0x1244   :  { %v4793_v21 = vadd.f32 1e-05, %v4791_v22 }
0x1245   :  { %v4790_v33 = vpop.xlane.xlu0 %4789 }
0x1246   :  { %5743 = vrsqrt.f32 %v4793_v21  ;;  %v4792_v53 = vmul.f32 0.03125, %v4790_v33 }
0x1248   :  { %v4794_v24 = vadd.f32 1e-05, %v4792_v53 }
0x124a   :  { %5745 = vrsqrt.f32 %v4794_v24 }
0x1253   :  { %v5744_v28 = vpop.eup %5743 }
0x1254   :  { %v4797_v31 = vmul.f32 %v5744_v28, %v6689_v4 }
0x1256   :  { %v4803_v27 = vmul.f32 %v4802_v61, %v4797_v31 }
0x1257   :  { %v5746_v32 = vpop.eup %5745 }
0x1258   :  { %v4798_v14 = vmul.f32 %v5746_v32, %v6687_v42  ;;  %v4809_v50 = vadd.f32 %v4808_v57, %v4803_v27 }
0x125a   :  { %v4804_v39 = vmul.f32 %v4802_v61, %v4798_v14  ;;  %5605 = vmatprep.mubr.msk.f32.mxu1 %vm232_vm1, %v4809_v50  ;;  %v5017_v61 = vld [vmem:[#allocation5 + $0x200] sm:$0x1] }
0x125c   :  { %v4810_v45 = vadd.f32 %v4808_v57, %v4804_v39 }
0x125e   :  { %5606 = vmatmul.mubr.msk.f32.vlgmr.msra.gmra.mxu1 %vm232_vm1, %v4810_v45 }
0x125f   :  { %5647 = vmatprep.mubr.msk.f32.mxu1 %vm5860_vm7, %v5859_v52 }
0x131e   :  { %v5607_v54 = vpop.f32.mrf.mxu1 }
0x131f   :  { %v4893_v19 = vadd.f32 %v5607_v54, %v4814_v35 }
0x1320   :  { %v4887_v36 = vpop.f32.mrf.mxu1 }
0x1321   :  { %v4888_v34 = vadd.f32 %v4887_v36, %v4814_v35  ;;  %v4897_v23 = vmax.f32 %v4893_v19, 0.0 }
0x1323   :  { %v4896_v58 = vmax.f32 %v4888_v34, 0.0 }
0x1325   :  { %5640 = vmatprep.mubr.f32.mxu0 %v4896_v58 }
0x1326   :  { %5641 = vmatmul.mubr.f32.vlgmr.msra.gmra.mxu0 %v4897_v23 }
0x13e6   :  { %v5642_v37 = vpop.f32.mrf.mxu0 }
0x13e7   :  { %v4974_v44 = vadd.f32 %v5642_v37, %v4901_v7 }
0x13e8   :  { %v4968_v41 = vpop.f32.mrf.mxu0 }
0x13e9   :  { %v4978_v5 = vadd.f32 %v4974_v44, %v4810_v45  ;;  %v4969_v49 = vadd.f32 %v4968_v41, %v4901_v7 }
0x13eb   :  { %v4977_v12 = vadd.f32 %v4969_v49, %v4809_v50  ;;  %v4982_v26 = vsel %vm232_vm1, %v4978_v5, 0.0 }
0x13ec   :  { %4983 = vadd.xlane.f32.xlu1 %v4982_v26 }
0x13ed   :  { %v4979_v8 = vsel %vm232_vm1, %v4977_v12, 0.0 }
0x13ee   :  { %4980 = vadd.xlane.f32.xlu0 %v4979_v8 }
0x1475   :  { %v4984_v42 = vpop.xlane.xlu1 %4983 }
0x1476   :  { %v4986_v4 = vmul.f32 0.03125, %v4984_v42 }
0x1477   :  { %v4981_v46 = vpop.xlane.xlu0 %4980 }
0x1478   :  { %v4988_v2 = vsub.f32 %v4978_v5, %v4986_v4  ;;  %v4985_v1 = vmul.f32 0.03125, %v4981_v46 }
0x147a   :  { %v4987_v0 = vsub.f32 %v4977_v12, %v4985_v1  ;;  %v4990_v25 = vmul.f32 %v4988_v2, %v4988_v2 }
0x147c   :  { %v4994_v16 = vsel %vm232_vm1, %v4990_v25, 0.0  ;;  %v4989_v3 = vmul.f32 %v4987_v0, %v4987_v0 }
0x147d   :  { %4995 = vadd.xlane.f32.xlu1 %v4994_v16 }
0x147e   :  { %v4991_v20 = vsel %vm232_vm1, %v4989_v3, 0.0 }
0x147f   :  { %4992 = vadd.xlane.f32.xlu0 %v4991_v20 }
0x148e   :  { %5020 = vperm.xlu1 %5669, %v5757_v17  }
0x1506   :  { %v4996_v59 = vpop.xlane.xlu1 %4995 }
0x1507   :  { %v4998_v18 = vmul.f32 0.03125, %v4996_v59 }
0x1508   :  { %v4993_v11 = vpop.xlane.xlu0 %4992 }
0x1509   :  { %v5000_v10 = vadd.f32 1e-05, %v4998_v18  ;;  %v4997_v62 = vmul.f32 0.03125, %v4993_v11 }
0x150a   :  { %v5021_v47 = vpop.permute.xlu1 %5020 }
0x150b   :  { %5747 = vrsqrt.f32 %v5000_v10  ;;  %v4999_v29 = vadd.f32 1e-05, %v4997_v62  ;;  %v5022_v28 = vrot.slane %v5021_v47, 1 }
0x150d   :  { %5749 = vrsqrt.f32 %v4999_v29 }
0x1518   :  { %v5748_v60 = vpop.eup %5747 }
0x1519   :  { %v5004_v40 = vmul.f32 %v5748_v60, %v4988_v2 }
0x151a   :  { %v5750_v38 = vpop.eup %5749 }
0x151b   :  { %v5003_v22 = vmul.f32 %v5750_v38, %v4987_v0  ;;  %v5010_v21 = vmul.f32 %v5008_v56, %v5004_v40 }
0x151d   :  { %v5016_v33 = vadd.f32 %v5014_v63, %v5010_v21  ;;  %v5009_v53 = vmul.f32 %v5008_v56, %v5003_v22 }
0x151f   :  { %5644 = vmatpush3.xpose.msk.msra.mxu1 %vm232_vm1, %v5016_v33  ;;  %v5015_v24 = vadd.f32 %v5014_v63, %v5009_v53 }
0x1520   :  { %5645 = vmatprep.subr.mxu1 %v5859_v52 }
0x1523   :  { %5646 = vmatpush3.xpose.msk.msra.mxu1 %vm232_vm1, %v5015_v24 }
0x1526   :  { %5648 = vmatmul.mubr.msk.f32.vlgmr.msra.gmra.mxu1 %vm232_vm1, %v5017_v61 }
0x15e6   :  { %v5099_v15 = vpop.f32.mrf.mxu1 }
0x15e7   :  { %v5100_v31 = vadd.f32 %v5099_v15, %v5022_v28 }
0x15e8   :  { %v5649_v55 = vpop.f32.mrf.mxu1 }
0x15e9   :  { %v5103_v43 = vand.u32 2147483647, %v5100_v31  ;;  %vm5107_vm8 = vcmp.ge.f32.partialorder %v5100_v31, 0.0 }
0x15eb   :  { %v5104_v57 = vsub.f32 0.0, %v5103_v43 }
0x15ed   :  { %v5105_v27 = vmul.f32 1.442695, %v5104_v57 }
0x15ef   :  { %5751 = vpow2.f32 %v5105_v27 }
0x15fc   :  { %v5752_v32 = vpop.eup %5751 }
0x15fd   :  { %v5109_v14 = vadd.f32 1.0, %v5752_v32  ;;  %v5108_v39 = vsel %vm5107_vm8, 1.0, %v5752_v32 }
0x15ff   :  { %5753 = vrcp.f32 %v5109_v14 }
0x160c   :  { %v5754_v50 = vpop.eup %5753 }
0x160d   :  { %v5111_v45 = vmul.f32 %v5754_v50, %v5108_v39 }
0x160f   :  { %5113 = vst.msk [vmem:[#allocation8] sm:$0x1] %vm5112_vm9, %v5111_v45 }
0x1610   :  { %5829 = shalt.err (!%p5826_p5)
}
0x1611   :  { %5123 = dma.vmem_to_hbm [thread:$0]  %s5121_s7, 16, %s6729_s3, [#allocation4]  }
0x1612   :  { %5842 = dma.done.wait [#allocation4], 16  }
0x1613   :  { %5843 = vsyncadd [#allocation4], 4294967280 }
0x1614   :  { %5127 = vsyncpa [#allocation3], 1 }
0x1615   :  { %5128 = vsyncpa [#allocation6], 1 }
0x1616   :  { %5129 = vsyncpa [#allocation4], 1 }

</bundles_post_ra>
